<compile_context>
chip_gen: v6e
topology: v6e:2x2x1
jax: 0.10.0
libtpu: 0.0.40
codegen_flags: <defaults>
</compile_context>

<pallas_src>
import functools

import jax
import jax.numpy as jnp
from jax import lax
from jax.experimental import pallas as pl
from jax.experimental.pallas import tpu as pltpu


# ----------------------------------------------------------------------------
# Fused kernel: masked conv3x3(pad=1) + bias + ReLU + NCHW-flatten + masked linear
# ----------------------------------------------------------------------------
def fused_pruned_forward_kernel(
    x_ref,      # (N, Cin, H*W)       f32  NCHW input, spatial dims flattened
    wc_ref,     # (Cout, KH*KW*Cin)   f32  conv weight, columns ordered (kh, kw, ci)
    mc_ref,     # (Cout, KH*KW*Cin)   f32  conv prune mask (same layout)
    bc_ref,     # (Cout, 1)           f32  conv bias
    wf_ref,     # (Dout, K)           f32  fc weight, torch layout (out, in)
    mf_ref,     # (Dout, K)           f32  fc prune mask
    bf_ref,     # (1, Dout)           f32  fc bias
    out_ref,    # (N, Dout)           f32  (the only HBM write of the kernel)
    xbig_ref,   # VMEM (Cin, 2*PAD+H*W)  zero-padded flat image (halo handling)
    patch_ref,  # VMEM (KH*KW*Cin, H*W)  im2col patch for one batch element
    acts_ref,   # VMEM (N, Cout*H*W)     flattened relu(conv) activations
    *, N, Cin, H, W, Cout, KH, KW, PAD,
):
    HW = H * W

    # Apply the prune masks to the prunable weights (PrunedModel._apply_mask),
    # hoisted: done once per forward, not per batch element / grid step.
    wcm = wc_ref[...] * mc_ref[...]            # (Cout, 36)
    wfm = wf_ref[...] * mf_ref[...]            # (Dout, K) lane-dense (K on lanes)

    # Lane-index -> w coordinate; masks for the horizontal taps that would
    # otherwise wrap across image rows in the flattened layout.
    w_idx = lax.broadcasted_iota(jnp.int32, (Cin, HW), 1) % W
    mask_wm1 = w_idx >= 1                      # reading column w-1 is valid
    mask_wp1 = w_idx < (W - 1)                 # reading column w+1 is valid

    # Zero the halo once; only the centre [PAD, PAD+HW) is ever rewritten, so
    # out-of-image (vertical) taps read zeros for every batch element.
    xbig_ref[...] = jnp.zeros_like(xbig_ref)

    for n in range(N):                         # static unroll, N is tiny
        xbig_ref[:, PAD:PAD + HW] = x_ref[n]   # (Cin, HW), 128-aligned lane store

        # Build the (KH*KW*Cin, HW) patch: row t*Cin+ci holds
        # x[n, ci, h + kh - 1, w + kw - 1] (zero outside the image).
        for kh in range(KH):
            for kw in range(KW):
                t = kh * KW + kw
                delta = (kh - 1) * W + (kw - 1)
                win = xbig_ref[:, PAD + delta:PAD + delta + HW]   # (Cin, HW)
                if kw == 0:
                    win = jnp.where(mask_wm1, win, 0.0)
                elif kw == KW - 1:
                    win = jnp.where(mask_wp1, win, 0.0)
                patch_ref[t * Cin:(t + 1) * Cin, :] = win

        # Conv as ONE K=36 MXU matmul, channel-major output (lane dim = HW=256).
        conv = jnp.dot(wcm, patch_ref[...],
                       preferred_element_type=jnp.float32)        # (Cout, HW)
        conv = jnp.maximum(conv + bc_ref[...], 0.0)               # bias + ReLU

        # torch.flatten on NCHW == channel-major rows laid out back to back.
        for co in range(Cout):
            acts_ref[n:n + 1, co * HW:(co + 1) * HW] = conv[co:co + 1, :]

    # Masked linear on the VMEM-resident activations: y = acts @ (W*m)^T + b.
    y = lax.dot_general(acts_ref[...], wfm, (((1,), (1,)), ((), ())),
                        preferred_element_type=jnp.float32)       # (N, Dout)
    out_ref[...] = y + bf_ref[...]


# ----------------------------------------------------------------------------
# PrunedModel.forward wrapper: one pallas_call for the whole model.
# ----------------------------------------------------------------------------
@jax.jit
def pruned_model_forward(x_nchw, params):
    N, Cin, H, W = x_nchw.shape
    wc = params["conv_w"]                      # (Cout, Cin, KH, KW) torch OIHW
    Cout, _, KH, KW = wc.shape
    Dout, K = params["fc_w"].shape             # torch Linear: (out, in)
    HW = H * W
    PAD = 128                                  # halo >= W+1, keeps stores lane-aligned
    KP = KH * KW * Cin

    # Parameter-layout prep (tiny tensors; effectively parameter-setup cost).
    w_cm = jnp.transpose(wc, (0, 2, 3, 1)).reshape(Cout, KP)
    m_cm = jnp.transpose(params["mask_conv_w"], (0, 2, 3, 1)).reshape(Cout, KP)
    bc = params["conv_b"].reshape(Cout, 1)
    bf = params["fc_b"].reshape(1, Dout)
    x_flat = x_nchw.reshape(N, Cin, HW)        # contiguous collapse, no data movement

    kernel = functools.partial(
        fused_pruned_forward_kernel,
        N=N, Cin=Cin, H=H, W=W, Cout=Cout, KH=KH, KW=KW, PAD=PAD)

    return pl.pallas_call(
        kernel,
        out_shape=jax.ShapeDtypeStruct((N, Dout), jnp.float32),
        grid_spec=pltpu.PrefetchScalarGridSpec(
            num_scalar_prefetch=0,
            grid=(1,),                         # whole (tiny) problem in one step
            in_specs=[
                pl.BlockSpec((N, Cin, HW), lambda i: (0, 0, 0)),
                pl.BlockSpec((Cout, KP), lambda i: (0, 0)),
                pl.BlockSpec((Cout, KP), lambda i: (0, 0)),
                pl.BlockSpec((Cout, 1), lambda i: (0, 0)),
                pl.BlockSpec((Dout, K), lambda i: (0, 0)),
                pl.BlockSpec((Dout, K), lambda i: (0, 0)),
                pl.BlockSpec((1, Dout), lambda i: (0, 0)),
            ],
            out_specs=pl.BlockSpec((N, Dout), lambda i: (0, 0)),
            scratch_shapes=[
                pltpu.VMEM((Cin, PAD + HW + PAD), jnp.float32),   # padded image
                pltpu.VMEM((KP, HW), jnp.float32),                # im2col patch
                pltpu.VMEM((N, Cout * HW), jnp.float32),          # flattened acts
            ],
        ),
        compiler_params=pltpu.CompilerParams(
            dimension_semantics=("arbitrary",)),
    )(x_flat, w_cm, m_cm, bc, params["fc_w"], params["mask_fc_w"], bf)


# ----------------------------------------------------------------------------
# Pure-JAX reference (masks applied each forward, like PrunedModel).
# ----------------------------------------------------------------------------
def reference_forward(x_nchw, params):
    wm = params["conv_w"] * params["mask_conv_w"]
    y = lax.conv_general_dilated(
        x_nchw, wm, window_strides=(1, 1), padding="SAME",
        dimension_numbers=("NCHW", "OIHW", "NCHW"),
    ) + params["conv_b"].reshape(1, -1, 1, 1)
    y = jnp.maximum(y, 0.0)
    flat = y.reshape(x_nchw.shape[0], -1)      # torch.flatten on NCHW
    return flat @ (params["fc_w"] * params["mask_fc_w"]).T + params["fc_b"]


# TODO(synk): feature_list / intermediate_forward / penultimate_forward are
# delegation-only hooks on the wrapped model; only forward() is implemented.

if __name__ == "__main__":
    N, Cin, H, W = 2, 4, 16, 16
    Cout, Dout = 8, 16
    K = Cout * H * W                           # 2048

    key = jax.random.PRNGKey(0)
    kx, kcw, kcb, kfw, kfb, kmc, kmf = jax.random.split(key, 7)

    x = jax.random.normal(kx, (N, Cin, H, W), jnp.float32)

    params = {
        # torch-native layouts: Conv2d.weight is OIHW, Linear.weight is (out, in)
        "conv_w": jax.random.normal(kcw, (Cout, Cin, 3, 3), jnp.float32) * 0.1,
        "conv_b": jax.random.normal(kcb, (Cout,), jnp.float32) * 0.1,
        "fc_w": jax.random.normal(kfw, (Dout, K), jnp.float32) * 0.05,
        "fc_b": jax.random.normal(kfb, (Dout,), jnp.float32) * 0.1,
        # prune masks (the PrunedModel buffers), ~50% sparsity, float as in module
        "mask_conv_w": jax.random.bernoulli(kmc, 0.5, (Cout, Cin, 3, 3)).astype(jnp.float32),
        "mask_fc_w": jax.random.bernoulli(kmf, 0.5, (Dout, K)).astype(jnp.float32),
    }

    out = pruned_model_forward(x, params)
    out = jax.block_until_ready(out)

    ref = reference_forward(x, params)
    assert out.shape == (N, Dout)
    assert jnp.allclose(out, ref, rtol=2e-3, atol=2e-3), "mismatch vs reference"

    print("KERNEL_OK")
</pallas_src>

<mosaic_0001>
module attributes {stable_mosaic.version = 11 : i64} {
  func.func @fused_pruned_forward_kernel(%arg0: i32, %arg1: memref<2x4x256xf32, #tpu.memory_space<vmem>>, %arg2: memref<8x36xf32, #tpu.memory_space<vmem>>, %arg3: memref<8x36xf32, #tpu.memory_space<vmem>>, %arg4: memref<8x1xf32, #tpu.memory_space<vmem>>, %arg5: memref<16x2048xf32, #tpu.memory_space<vmem>>, %arg6: memref<16x2048xf32, #tpu.memory_space<vmem>>, %arg7: memref<1x16xf32, #tpu.memory_space<vmem>>, %arg8: memref<2x16xf32, #tpu.memory_space<vmem>>, %arg9: memref<4x512xf32, #tpu.memory_space<vmem>>, %arg10: memref<36x256xf32, #tpu.memory_space<vmem>>, %arg11: memref<2x2048xf32, #tpu.memory_space<vmem>>) attributes {dimension_semantics = [#tpu.dimension_semantics<arbitrary>], iteration_bounds = array<i64: 1>, scalar_prefetch = 0 : i64, scratch_operands = 3 : i64, tpu.core_type = #tpu.core_type<tc>, window_params = [{pipeline_mode = #tpu.pipeline_mode<synchronous>, transform_indices = @transform_0, window_bounds = array<i64: 2, 4, 256>}, {pipeline_mode = #tpu.pipeline_mode<synchronous>, transform_indices = @transform_1, window_bounds = array<i64: 8, 36>}, {pipeline_mode = #tpu.pipeline_mode<synchronous>, transform_indices = @transform_2, window_bounds = array<i64: 8, 36>}, {pipeline_mode = #tpu.pipeline_mode<synchronous>, transform_indices = @transform_3, window_bounds = array<i64: 8, 1>}, {pipeline_mode = #tpu.pipeline_mode<synchronous>, transform_indices = @transform_4, window_bounds = array<i64: 16, 2048>}, {pipeline_mode = #tpu.pipeline_mode<synchronous>, transform_indices = @transform_5, window_bounds = array<i64: 16, 2048>}, {pipeline_mode = #tpu.pipeline_mode<synchronous>, transform_indices = @transform_6, window_bounds = array<i64: 1, 16>}, {pipeline_mode = #tpu.pipeline_mode<synchronous>, transform_indices = @transform_7, window_bounds = array<i64: 2, 16>}]} {
    %c0 = arith.constant 0 : index
    %c0_0 = arith.constant 0 : index
    %0 = vector.load %arg2[%c0, %c0_0] : memref<8x36xf32, #tpu.memory_space<vmem>>, vector<8x36xf32>
    %c0_1 = arith.constant 0 : index
    %c0_2 = arith.constant 0 : index
    %1 = vector.load %arg3[%c0_1, %c0_2] : memref<8x36xf32, #tpu.memory_space<vmem>>, vector<8x36xf32>
    %2 = arith.mulf %0, %1 : vector<8x36xf32>
    %c0_3 = arith.constant 0 : index
    %c0_4 = arith.constant 0 : index
    %3 = vector.load %arg5[%c0_3, %c0_4] : memref<16x2048xf32, #tpu.memory_space<vmem>>, vector<16x2048xf32>
    %c0_5 = arith.constant 0 : index
    %c0_6 = arith.constant 0 : index
    %4 = vector.load %arg6[%c0_5, %c0_6] : memref<16x2048xf32, #tpu.memory_space<vmem>>, vector<16x2048xf32>
    %5 = arith.mulf %3, %4 : vector<16x2048xf32>
    %6 = tpu.iota {dimensions = array<i32: 1>} : vector<4x256xi32>
    %c16_i32 = arith.constant 16 : i32
    %c0_i32 = arith.constant 0 : i32
    %7 = arith.cmpi eq, %c16_i32, %c0_i32 : i32
    %c1_i32 = arith.constant 1 : i32
    %8 = arith.select %7, %c1_i32, %c16_i32 : i32
    %9 = vector.broadcast %8 : i32 to vector<4x256xi32>
    %10 = arith.remsi %6, %9 : vector<4x256xi32>
    %c0_i32_7 = arith.constant 0 : i32
    %11 = vector.broadcast %c0_i32_7 : i32 to vector<4x256xi32>
    %12 = arith.cmpi ne, %10, %11 : vector<4x256xi32>
    %c0_i32_8 = arith.constant 0 : i32
    %13 = vector.broadcast %c0_i32_8 : i32 to vector<4x256xi32>
    %14 = arith.cmpi slt, %10, %13 : vector<4x256xi32>
    %c0_i32_9 = arith.constant 0 : i32
    %15 = arith.cmpi slt, %8, %c0_i32_9 : i32
    %16 = vector.broadcast %15 : i1 to vector<4x256xi1>
    %17 = vector.broadcast %16 : vector<4x256xi1> to vector<4x256xi1>
    %18 = arith.xori %14, %17 : vector<4x256xi1>
    %19 = arith.andi %18, %12 : vector<4x256xi1>
    %20 = vector.broadcast %8 : i32 to vector<4x256xi32>
    %21 = arith.addi %10, %20 : vector<4x256xi32>
    %22 = arith.select %19, %21, %10 : vector<4x256xi1>, vector<4x256xi32>
    %c1_i32_10 = arith.constant 1 : i32
    %23 = vector.broadcast %c1_i32_10 : i32 to vector<4x256xi32>
    %24 = arith.cmpi sge, %22, %23 : vector<4x256xi32>
    %c15_i32 = arith.constant 15 : i32
    %25 = vector.broadcast %c15_i32 : i32 to vector<4x256xi32>
    %26 = arith.cmpi slt, %22, %25 : vector<4x256xi32>
    %cst = arith.constant 0.000000e+00 : f32
    %27 = vector.broadcast %cst : f32 to vector<4x512xf32>
    %c0_11 = arith.constant 0 : index
    %c0_12 = arith.constant 0 : index
    %28 = vector.load %arg9[%c0_11, %c0_12] : memref<4x512xf32, #tpu.memory_space<vmem>>, vector<4x512xf32>
    tpu.vector_store %arg9[%c0_11, %c0_12], %27 {strides = array<i32>} : memref<4x512xf32, #tpu.memory_space<vmem>>, vector<4x512xf32>,
    %c0_13 = arith.constant 0 : index
    %c0_14 = arith.constant 0 : index
    %c0_15 = arith.constant 0 : index
    %29 = vector.load %arg1[%c0_13, %c0_14, %c0_15] : memref<2x4x256xf32, #tpu.memory_space<vmem>>, vector<1x4x256xf32>
    %30 = vector.shape_cast %29 : vector<1x4x256xf32> to vector<4x256xf32>
    %c0_16 = arith.constant 0 : index
    %c128 = arith.constant 128 : index
    %31 = vector.load %arg9[%c0_16, %c128] : memref<4x512xf32, #tpu.memory_space<vmem>>, vector<4x256xf32>
    tpu.vector_store %arg9[%c0_16, %c128], %30 {strides = array<i32>} : memref<4x512xf32, #tpu.memory_space<vmem>>, vector<4x256xf32>,
    %c0_17 = arith.constant 0 : index
    %c111 = arith.constant 111 : index
    %32 = vector.load %arg9[%c0_17, %c111] : memref<4x512xf32, #tpu.memory_space<vmem>>, vector<4x256xf32>
    %cst_18 = arith.constant 0.000000e+00 : f32
    %33 = vector.broadcast %cst_18 : f32 to vector<4x256xf32>
    %34 = arith.select %24, %32, %33 : vector<4x256xi1>, vector<4x256xf32>
    %c0_19 = arith.constant 0 : index
    %c0_20 = arith.constant 0 : index
    %35 = vector.load %arg10[%c0_19, %c0_20] : memref<36x256xf32, #tpu.memory_space<vmem>>, vector<4x256xf32>
    tpu.vector_store %arg10[%c0_19, %c0_20], %34 {strides = array<i32>} : memref<36x256xf32, #tpu.memory_space<vmem>>, vector<4x256xf32>,
    %c0_21 = arith.constant 0 : index
    %c112 = arith.constant 112 : index
    %36 = vector.load %arg9[%c0_21, %c112] : memref<4x512xf32, #tpu.memory_space<vmem>>, vector<4x256xf32>
    %c4 = arith.constant 4 : index
    %c0_22 = arith.constant 0 : index
    %37 = vector.load %arg10[%c4, %c0_22] : memref<36x256xf32, #tpu.memory_space<vmem>>, vector<4x256xf32>
    tpu.vector_store %arg10[%c4, %c0_22], %36 {strides = array<i32>} : memref<36x256xf32, #tpu.memory_space<vmem>>, vector<4x256xf32>,
    %c0_23 = arith.constant 0 : index
    %c113 = arith.constant 113 : index
    %38 = vector.load %arg9[%c0_23, %c113] : memref<4x512xf32, #tpu.memory_space<vmem>>, vector<4x256xf32>
    %cst_24 = arith.constant 0.000000e+00 : f32
    %39 = vector.broadcast %cst_24 : f32 to vector<4x256xf32>
    %40 = arith.select %26, %38, %39 : vector<4x256xi1>, vector<4x256xf32>
    %c8 = arith.constant 8 : index
    %c0_25 = arith.constant 0 : index
    %41 = vector.load %arg10[%c8, %c0_25] : memref<36x256xf32, #tpu.memory_space<vmem>>, vector<4x256xf32>
    tpu.vector_store %arg10[%c8, %c0_25], %40 {strides = array<i32>} : memref<36x256xf32, #tpu.memory_space<vmem>>, vector<4x256xf32>,
    %c0_26 = arith.constant 0 : index
    %c127 = arith.constant 127 : index
    %42 = vector.load %arg9[%c0_26, %c127] : memref<4x512xf32, #tpu.memory_space<vmem>>, vector<4x256xf32>
    %cst_27 = arith.constant 0.000000e+00 : f32
    %43 = vector.broadcast %cst_27 : f32 to vector<4x256xf32>
    %44 = arith.select %24, %42, %43 : vector<4x256xi1>, vector<4x256xf32>
    %c12 = arith.constant 12 : index
    %c0_28 = arith.constant 0 : index
    %45 = vector.load %arg10[%c12, %c0_28] : memref<36x256xf32, #tpu.memory_space<vmem>>, vector<4x256xf32>
    tpu.vector_store %arg10[%c12, %c0_28], %44 {strides = array<i32>} : memref<36x256xf32, #tpu.memory_space<vmem>>, vector<4x256xf32>,
    %c0_29 = arith.constant 0 : index
    %c128_30 = arith.constant 128 : index
    %46 = vector.load %arg9[%c0_29, %c128_30] : memref<4x512xf32, #tpu.memory_space<vmem>>, vector<4x256xf32>
    %c16 = arith.constant 16 : index
    %c0_31 = arith.constant 0 : index
    %47 = vector.load %arg10[%c16, %c0_31] : memref<36x256xf32, #tpu.memory_space<vmem>>, vector<4x256xf32>
    tpu.vector_store %arg10[%c16, %c0_31], %46 {strides = array<i32>} : memref<36x256xf32, #tpu.memory_space<vmem>>, vector<4x256xf32>,
    %c0_32 = arith.constant 0 : index
    %c129 = arith.constant 129 : index
    %48 = vector.load %arg9[%c0_32, %c129] : memref<4x512xf32, #tpu.memory_space<vmem>>, vector<4x256xf32>
    %cst_33 = arith.constant 0.000000e+00 : f32
    %49 = vector.broadcast %cst_33 : f32 to vector<4x256xf32>
    %50 = arith.select %26, %48, %49 : vector<4x256xi1>, vector<4x256xf32>
    %c20 = arith.constant 20 : index
    %c0_34 = arith.constant 0 : index
    %51 = vector.load %arg10[%c20, %c0_34] : memref<36x256xf32, #tpu.memory_space<vmem>>, vector<4x256xf32>
    tpu.vector_store %arg10[%c20, %c0_34], %50 {strides = array<i32>} : memref<36x256xf32, #tpu.memory_space<vmem>>, vector<4x256xf32>,
    %c0_35 = arith.constant 0 : index
    %c143 = arith.constant 143 : index
    %52 = vector.load %arg9[%c0_35, %c143] : memref<4x512xf32, #tpu.memory_space<vmem>>, vector<4x256xf32>
    %cst_36 = arith.constant 0.000000e+00 : f32
    %53 = vector.broadcast %cst_36 : f32 to vector<4x256xf32>
    %54 = arith.select %24, %52, %53 : vector<4x256xi1>, vector<4x256xf32>
    %c24 = arith.constant 24 : index
    %c0_37 = arith.constant 0 : index
    %55 = vector.load %arg10[%c24, %c0_37] : memref<36x256xf32, #tpu.memory_space<vmem>>, vector<4x256xf32>
    tpu.vector_store %arg10[%c24, %c0_37], %54 {strides = array<i32>} : memref<36x256xf32, #tpu.memory_space<vmem>>, vector<4x256xf32>,
    %c0_38 = arith.constant 0 : index
    %c144 = arith.constant 144 : index
    %56 = vector.load %arg9[%c0_38, %c144] : memref<4x512xf32, #tpu.memory_space<vmem>>, vector<4x256xf32>
    %c28 = arith.constant 28 : index
    %c0_39 = arith.constant 0 : index
    %57 = vector.load %arg10[%c28, %c0_39] : memref<36x256xf32, #tpu.memory_space<vmem>>, vector<4x256xf32>
    tpu.vector_store %arg10[%c28, %c0_39], %56 {strides = array<i32>} : memref<36x256xf32, #tpu.memory_space<vmem>>, vector<4x256xf32>,
    %c0_40 = arith.constant 0 : index
    %c145 = arith.constant 145 : index
    %58 = vector.load %arg9[%c0_40, %c145] : memref<4x512xf32, #tpu.memory_space<vmem>>, vector<4x256xf32>
    %cst_41 = arith.constant 0.000000e+00 : f32
    %59 = vector.broadcast %cst_41 : f32 to vector<4x256xf32>
    %60 = arith.select %26, %58, %59 : vector<4x256xi1>, vector<4x256xf32>
    %c32 = arith.constant 32 : index
    %c0_42 = arith.constant 0 : index
    %61 = vector.load %arg10[%c32, %c0_42] : memref<36x256xf32, #tpu.memory_space<vmem>>, vector<4x256xf32>
    tpu.vector_store %arg10[%c32, %c0_42], %60 {strides = array<i32>} : memref<36x256xf32, #tpu.memory_space<vmem>>, vector<4x256xf32>,
    %c0_43 = arith.constant 0 : index
    %c0_44 = arith.constant 0 : index
    %62 = vector.load %arg10[%c0_43, %c0_44] : memref<36x256xf32, #tpu.memory_space<vmem>>, vector<36x256xf32>
    %cst_45 = arith.constant dense<0.000000e+00> : vector<8x256xf32>
    %63 = tpu.matmul %2, %62, %cst_45 {dimension_numbers = #tpu.dot_dimension_numbers<[1], [0], [0], [1], [0, 0, 1, 1], [], []>} : vector<8x36xf32>, vector<36x256xf32>, vector<8x256xf32> -> vector<8x256xf32>
    %c0_46 = arith.constant 0 : index
    %c0_47 = arith.constant 0 : index
    %64 = vector.load %arg4[%c0_46, %c0_47] : memref<8x1xf32, #tpu.memory_space<vmem>>, vector<8x1xf32>
    %65 = vector.broadcast %64 : vector<8x1xf32> to vector<8x256xf32>
    %66 = arith.addf %63, %65 : vector<8x256xf32>
    %cst_48 = arith.constant 0.000000e+00 : f32
    %67 = vector.broadcast %cst_48 : f32 to vector<8x256xf32>
    %68 = arith.maximumf %66, %67 : vector<8x256xf32>
    %69 = vector.extract_strided_slice %68 {offsets = [0, 0], sizes = [1, 256], strides = [1, 1]} : vector<8x256xf32> to vector<1x256xf32>
    %c0_49 = arith.constant 0 : index
    %c0_50 = arith.constant 0 : index
    %70 = vector.load %arg11[%c0_49, %c0_50] : memref<2x2048xf32, #tpu.memory_space<vmem>>, vector<1x256xf32>
    tpu.vector_store %arg11[%c0_49, %c0_50], %69 {strides = array<i32>} : memref<2x2048xf32, #tpu.memory_space<vmem>>, vector<1x256xf32>,
    %71 = vector.extract_strided_slice %68 {offsets = [1, 0], sizes = [1, 256], strides = [1, 1]} : vector<8x256xf32> to vector<1x256xf32>
    %c0_51 = arith.constant 0 : index
    %c256 = arith.constant 256 : index
    %72 = vector.load %arg11[%c0_51, %c256] : memref<2x2048xf32, #tpu.memory_space<vmem>>, vector<1x256xf32>
    tpu.vector_store %arg11[%c0_51, %c256], %71 {strides = array<i32>} : memref<2x2048xf32, #tpu.memory_space<vmem>>, vector<1x256xf32>,
    %73 = vector.extract_strided_slice %68 {offsets = [2, 0], sizes = [1, 256], strides = [1, 1]} : vector<8x256xf32> to vector<1x256xf32>
    %c0_52 = arith.constant 0 : index
    %c512 = arith.constant 512 : index
    %74 = vector.load %arg11[%c0_52, %c512] : memref<2x2048xf32, #tpu.memory_space<vmem>>, vector<1x256xf32>
    tpu.vector_store %arg11[%c0_52, %c512], %73 {strides = array<i32>} : memref<2x2048xf32, #tpu.memory_space<vmem>>, vector<1x256xf32>,
    %75 = vector.extract_strided_slice %68 {offsets = [3, 0], sizes = [1, 256], strides = [1, 1]} : vector<8x256xf32> to vector<1x256xf32>
    %c0_53 = arith.constant 0 : index
    %c768 = arith.constant 768 : index
    %76 = vector.load %arg11[%c0_53, %c768] : memref<2x2048xf32, #tpu.memory_space<vmem>>, vector<1x256xf32>
    tpu.vector_store %arg11[%c0_53, %c768], %75 {strides = array<i32>} : memref<2x2048xf32, #tpu.memory_space<vmem>>, vector<1x256xf32>,
    %77 = vector.extract_strided_slice %68 {offsets = [4, 0], sizes = [1, 256], strides = [1, 1]} : vector<8x256xf32> to vector<1x256xf32>
    %c0_54 = arith.constant 0 : index
    %c1024 = arith.constant 1024 : index
    %78 = vector.load %arg11[%c0_54, %c1024] : memref<2x2048xf32, #tpu.memory_space<vmem>>, vector<1x256xf32>
    tpu.vector_store %arg11[%c0_54, %c1024], %77 {strides = array<i32>} : memref<2x2048xf32, #tpu.memory_space<vmem>>, vector<1x256xf32>,
    %79 = vector.extract_strided_slice %68 {offsets = [5, 0], sizes = [1, 256], strides = [1, 1]} : vector<8x256xf32> to vector<1x256xf32>
    %c0_55 = arith.constant 0 : index
    %c1280 = arith.constant 1280 : index
    %80 = vector.load %arg11[%c0_55, %c1280] : memref<2x2048xf32, #tpu.memory_space<vmem>>, vector<1x256xf32>
    tpu.vector_store %arg11[%c0_55, %c1280], %79 {strides = array<i32>} : memref<2x2048xf32, #tpu.memory_space<vmem>>, vector<1x256xf32>,
    %81 = vector.extract_strided_slice %68 {offsets = [6, 0], sizes = [1, 256], strides = [1, 1]} : vector<8x256xf32> to vector<1x256xf32>
    %c0_56 = arith.constant 0 : index
    %c1536 = arith.constant 1536 : index
    %82 = vector.load %arg11[%c0_56, %c1536] : memref<2x2048xf32, #tpu.memory_space<vmem>>, vector<1x256xf32>
    tpu.vector_store %arg11[%c0_56, %c1536], %81 {strides = array<i32>} : memref<2x2048xf32, #tpu.memory_space<vmem>>, vector<1x256xf32>,
    %83 = vector.extract_strided_slice %68 {offsets = [7, 0], sizes = [1, 256], strides = [1, 1]} : vector<8x256xf32> to vector<1x256xf32>
    %c0_57 = arith.constant 0 : index
    %c1792 = arith.constant 1792 : index
    %84 = vector.load %arg11[%c0_57, %c1792] : memref<2x2048xf32, #tpu.memory_space<vmem>>, vector<1x256xf32>
    tpu.vector_store %arg11[%c0_57, %c1792], %83 {strides = array<i32>} : memref<2x2048xf32, #tpu.memory_space<vmem>>, vector<1x256xf32>,
    %c1 = arith.constant 1 : index
    %c0_58 = arith.constant 0 : index
    %c0_59 = arith.constant 0 : index
    %85 = vector.load %arg1[%c1, %c0_58, %c0_59] : memref<2x4x256xf32, #tpu.memory_space<vmem>>, vector<1x4x256xf32>
    %86 = vector.shape_cast %85 : vector<1x4x256xf32> to vector<4x256xf32>
    %c0_60 = arith.constant 0 : index
    %c128_61 = arith.constant 128 : index
    %87 = vector.load %arg9[%c0_60, %c128_61] : memref<4x512xf32, #tpu.memory_space<vmem>>, vector<4x256xf32>
    tpu.vector_store %arg9[%c0_60, %c128_61], %86 {strides = array<i32>} : memref<4x512xf32, #tpu.memory_space<vmem>>, vector<4x256xf32>,
    %c0_62 = arith.constant 0 : index
    %c111_63 = arith.constant 111 : index
    %88 = vector.load %arg9[%c0_62, %c111_63] : memref<4x512xf32, #tpu.memory_space<vmem>>, vector<4x256xf32>
    %cst_64 = arith.constant 0.000000e+00 : f32
    %89 = vector.broadcast %cst_64 : f32 to vector<4x256xf32>
    %90 = arith.select %24, %88, %89 : vector<4x256xi1>, vector<4x256xf32>
    %c0_65 = arith.constant 0 : index
    %c0_66 = arith.constant 0 : index
    %91 = vector.load %arg10[%c0_65, %c0_66] : memref<36x256xf32, #tpu.memory_space<vmem>>, vector<4x256xf32>
    tpu.vector_store %arg10[%c0_65, %c0_66], %90 {strides = array<i32>} : memref<36x256xf32, #tpu.memory_space<vmem>>, vector<4x256xf32>,
    %c0_67 = arith.constant 0 : index
    %c112_68 = arith.constant 112 : index
    %92 = vector.load %arg9[%c0_67, %c112_68] : memref<4x512xf32, #tpu.memory_space<vmem>>, vector<4x256xf32>
    %c4_69 = arith.constant 4 : index
    %c0_70 = arith.constant 0 : index
    %93 = vector.load %arg10[%c4_69, %c0_70] : memref<36x256xf32, #tpu.memory_space<vmem>>, vector<4x256xf32>
    tpu.vector_store %arg10[%c4_69, %c0_70], %92 {strides = array<i32>} : memref<36x256xf32, #tpu.memory_space<vmem>>, vector<4x256xf32>,
    %c0_71 = arith.constant 0 : index
    %c113_72 = arith.constant 113 : index
    %94 = vector.load %arg9[%c0_71, %c113_72] : memref<4x512xf32, #tpu.memory_space<vmem>>, vector<4x256xf32>
    %cst_73 = arith.constant 0.000000e+00 : f32
    %95 = vector.broadcast %cst_73 : f32 to vector<4x256xf32>
    %96 = arith.select %26, %94, %95 : vector<4x256xi1>, vector<4x256xf32>
    %c8_74 = arith.constant 8 : index
    %c0_75 = arith.constant 0 : index
    %97 = vector.load %arg10[%c8_74, %c0_75] : memref<36x256xf32, #tpu.memory_space<vmem>>, vector<4x256xf32>
    tpu.vector_store %arg10[%c8_74, %c0_75], %96 {strides = array<i32>} : memref<36x256xf32, #tpu.memory_space<vmem>>, vector<4x256xf32>,
    %c0_76 = arith.constant 0 : index
    %c127_77 = arith.constant 127 : index
    %98 = vector.load %arg9[%c0_76, %c127_77] : memref<4x512xf32, #tpu.memory_space<vmem>>, vector<4x256xf32>
    %cst_78 = arith.constant 0.000000e+00 : f32
    %99 = vector.broadcast %cst_78 : f32 to vector<4x256xf32>
    %100 = arith.select %24, %98, %99 : vector<4x256xi1>, vector<4x256xf32>
    %c12_79 = arith.constant 12 : index
    %c0_80 = arith.constant 0 : index
    %101 = vector.load %arg10[%c12_79, %c0_80] : memref<36x256xf32, #tpu.memory_space<vmem>>, vector<4x256xf32>
    tpu.vector_store %arg10[%c12_79, %c0_80], %100 {strides = array<i32>} : memref<36x256xf32, #tpu.memory_space<vmem>>, vector<4x256xf32>,
    %c0_81 = arith.constant 0 : index
    %c128_82 = arith.constant 128 : index
    %102 = vector.load %arg9[%c0_81, %c128_82] : memref<4x512xf32, #tpu.memory_space<vmem>>, vector<4x256xf32>
    %c16_83 = arith.constant 16 : index
    %c0_84 = arith.constant 0 : index
    %103 = vector.load %arg10[%c16_83, %c0_84] : memref<36x256xf32, #tpu.memory_space<vmem>>, vector<4x256xf32>
    tpu.vector_store %arg10[%c16_83, %c0_84], %102 {strides = array<i32>} : memref<36x256xf32, #tpu.memory_space<vmem>>, vector<4x256xf32>,
    %c0_85 = arith.constant 0 : index
    %c129_86 = arith.constant 129 : index
    %104 = vector.load %arg9[%c0_85, %c129_86] : memref<4x512xf32, #tpu.memory_space<vmem>>, vector<4x256xf32>
    %cst_87 = arith.constant 0.000000e+00 : f32
    %105 = vector.broadcast %cst_87 : f32 to vector<4x256xf32>
    %106 = arith.select %26, %104, %105 : vector<4x256xi1>, vector<4x256xf32>
    %c20_88 = arith.constant 20 : index
    %c0_89 = arith.constant 0 : index
    %107 = vector.load %arg10[%c20_88, %c0_89] : memref<36x256xf32, #tpu.memory_space<vmem>>, vector<4x256xf32>
    tpu.vector_store %arg10[%c20_88, %c0_89], %106 {strides = array<i32>} : memref<36x256xf32, #tpu.memory_space<vmem>>, vector<4x256xf32>,
    %c0_90 = arith.constant 0 : index
    %c143_91 = arith.constant 143 : index
    %108 = vector.load %arg9[%c0_90, %c143_91] : memref<4x512xf32, #tpu.memory_space<vmem>>, vector<4x256xf32>
    %cst_92 = arith.constant 0.000000e+00 : f32
    %109 = vector.broadcast %cst_92 : f32 to vector<4x256xf32>
    %110 = arith.select %24, %108, %109 : vector<4x256xi1>, vector<4x256xf32>
    %c24_93 = arith.constant 24 : index
    %c0_94 = arith.constant 0 : index
    %111 = vector.load %arg10[%c24_93, %c0_94] : memref<36x256xf32, #tpu.memory_space<vmem>>, vector<4x256xf32>
    tpu.vector_store %arg10[%c24_93, %c0_94], %110 {strides = array<i32>} : memref<36x256xf32, #tpu.memory_space<vmem>>, vector<4x256xf32>,
    %c0_95 = arith.constant 0 : index
    %c144_96 = arith.constant 144 : index
    %112 = vector.load %arg9[%c0_95, %c144_96] : memref<4x512xf32, #tpu.memory_space<vmem>>, vector<4x256xf32>
    %c28_97 = arith.constant 28 : index
    %c0_98 = arith.constant 0 : index
    %113 = vector.load %arg10[%c28_97, %c0_98] : memref<36x256xf32, #tpu.memory_space<vmem>>, vector<4x256xf32>
    tpu.vector_store %arg10[%c28_97, %c0_98], %112 {strides = array<i32>} : memref<36x256xf32, #tpu.memory_space<vmem>>, vector<4x256xf32>,
    %c0_99 = arith.constant 0 : index
    %c145_100 = arith.constant 145 : index
    %114 = vector.load %arg9[%c0_99, %c145_100] : memref<4x512xf32, #tpu.memory_space<vmem>>, vector<4x256xf32>
    %cst_101 = arith.constant 0.000000e+00 : f32
    %115 = vector.broadcast %cst_101 : f32 to vector<4x256xf32>
    %116 = arith.select %26, %114, %115 : vector<4x256xi1>, vector<4x256xf32>
    %c32_102 = arith.constant 32 : index
    %c0_103 = arith.constant 0 : index
    %117 = vector.load %arg10[%c32_102, %c0_103] : memref<36x256xf32, #tpu.memory_space<vmem>>, vector<4x256xf32>
    tpu.vector_store %arg10[%c32_102, %c0_103], %116 {strides = array<i32>} : memref<36x256xf32, #tpu.memory_space<vmem>>, vector<4x256xf32>,
    %c0_104 = arith.constant 0 : index
    %c0_105 = arith.constant 0 : index
    %118 = vector.load %arg10[%c0_104, %c0_105] : memref<36x256xf32, #tpu.memory_space<vmem>>, vector<36x256xf32>
    %cst_106 = arith.constant dense<0.000000e+00> : vector<8x256xf32>
    %119 = tpu.matmul %2, %118, %cst_106 {dimension_numbers = #tpu.dot_dimension_numbers<[1], [0], [0], [1], [0, 0, 1, 1], [], []>} : vector<8x36xf32>, vector<36x256xf32>, vector<8x256xf32> -> vector<8x256xf32>
    %c0_107 = arith.constant 0 : index
    %c0_108 = arith.constant 0 : index
    %120 = vector.load %arg4[%c0_107, %c0_108] : memref<8x1xf32, #tpu.memory_space<vmem>>, vector<8x1xf32>
    %121 = vector.broadcast %120 : vector<8x1xf32> to vector<8x256xf32>
    %122 = arith.addf %119, %121 : vector<8x256xf32>
    %cst_109 = arith.constant 0.000000e+00 : f32
    %123 = vector.broadcast %cst_109 : f32 to vector<8x256xf32>
    %124 = arith.maximumf %122, %123 : vector<8x256xf32>
    %125 = vector.extract_strided_slice %124 {offsets = [0, 0], sizes = [1, 256], strides = [1, 1]} : vector<8x256xf32> to vector<1x256xf32>
    %c1_110 = arith.constant 1 : index
    %c0_111 = arith.constant 0 : index
    %126 = vector.load %arg11[%c1_110, %c0_111] : memref<2x2048xf32, #tpu.memory_space<vmem>>, vector<1x256xf32>
    tpu.vector_store %arg11[%c1_110, %c0_111], %125 {strides = array<i32>} : memref<2x2048xf32, #tpu.memory_space<vmem>>, vector<1x256xf32>,
    %127 = vector.extract_strided_slice %124 {offsets = [1, 0], sizes = [1, 256], strides = [1, 1]} : vector<8x256xf32> to vector<1x256xf32>
    %c1_112 = arith.constant 1 : index
    %c256_113 = arith.constant 256 : index
    %128 = vector.load %arg11[%c1_112, %c256_113] : memref<2x2048xf32, #tpu.memory_space<vmem>>, vector<1x256xf32>
    tpu.vector_store %arg11[%c1_112, %c256_113], %127 {strides = array<i32>} : memref<2x2048xf32, #tpu.memory_space<vmem>>, vector<1x256xf32>,
    %129 = vector.extract_strided_slice %124 {offsets = [2, 0], sizes = [1, 256], strides = [1, 1]} : vector<8x256xf32> to vector<1x256xf32>
    %c1_114 = arith.constant 1 : index
    %c512_115 = arith.constant 512 : index
    %130 = vector.load %arg11[%c1_114, %c512_115] : memref<2x2048xf32, #tpu.memory_space<vmem>>, vector<1x256xf32>
    tpu.vector_store %arg11[%c1_114, %c512_115], %129 {strides = array<i32>} : memref<2x2048xf32, #tpu.memory_space<vmem>>, vector<1x256xf32>,
    %131 = vector.extract_strided_slice %124 {offsets = [3, 0], sizes = [1, 256], strides = [1, 1]} : vector<8x256xf32> to vector<1x256xf32>
    %c1_116 = arith.constant 1 : index
    %c768_117 = arith.constant 768 : index
    %132 = vector.load %arg11[%c1_116, %c768_117] : memref<2x2048xf32, #tpu.memory_space<vmem>>, vector<1x256xf32>
    tpu.vector_store %arg11[%c1_116, %c768_117], %131 {strides = array<i32>} : memref<2x2048xf32, #tpu.memory_space<vmem>>, vector<1x256xf32>,
    %133 = vector.extract_strided_slice %124 {offsets = [4, 0], sizes = [1, 256], strides = [1, 1]} : vector<8x256xf32> to vector<1x256xf32>
    %c1_118 = arith.constant 1 : index
    %c1024_119 = arith.constant 1024 : index
    %134 = vector.load %arg11[%c1_118, %c1024_119] : memref<2x2048xf32, #tpu.memory_space<vmem>>, vector<1x256xf32>
    tpu.vector_store %arg11[%c1_118, %c1024_119], %133 {strides = array<i32>} : memref<2x2048xf32, #tpu.memory_space<vmem>>, vector<1x256xf32>,
    %135 = vector.extract_strided_slice %124 {offsets = [5, 0], sizes = [1, 256], strides = [1, 1]} : vector<8x256xf32> to vector<1x256xf32>
    %c1_120 = arith.constant 1 : index
    %c1280_121 = arith.constant 1280 : index
    %136 = vector.load %arg11[%c1_120, %c1280_121] : memref<2x2048xf32, #tpu.memory_space<vmem>>, vector<1x256xf32>
    tpu.vector_store %arg11[%c1_120, %c1280_121], %135 {strides = array<i32>} : memref<2x2048xf32, #tpu.memory_space<vmem>>, vector<1x256xf32>,
    %137 = vector.extract_strided_slice %124 {offsets = [6, 0], sizes = [1, 256], strides = [1, 1]} : vector<8x256xf32> to vector<1x256xf32>
    %c1_122 = arith.constant 1 : index
    %c1536_123 = arith.constant 1536 : index
    %138 = vector.load %arg11[%c1_122, %c1536_123] : memref<2x2048xf32, #tpu.memory_space<vmem>>, vector<1x256xf32>
    tpu.vector_store %arg11[%c1_122, %c1536_123], %137 {strides = array<i32>} : memref<2x2048xf32, #tpu.memory_space<vmem>>, vector<1x256xf32>,
    %139 = vector.extract_strided_slice %124 {offsets = [7, 0], sizes = [1, 256], strides = [1, 1]} : vector<8x256xf32> to vector<1x256xf32>
    %c1_124 = arith.constant 1 : index
    %c1792_125 = arith.constant 1792 : index
    %140 = vector.load %arg11[%c1_124, %c1792_125] : memref<2x2048xf32, #tpu.memory_space<vmem>>, vector<1x256xf32>
    tpu.vector_store %arg11[%c1_124, %c1792_125], %139 {strides = array<i32>} : memref<2x2048xf32, #tpu.memory_space<vmem>>, vector<1x256xf32>,
    %c0_126 = arith.constant 0 : index
    %c0_127 = arith.constant 0 : index
    %141 = vector.load %arg11[%c0_126, %c0_127] : memref<2x2048xf32, #tpu.memory_space<vmem>>, vector<2x2048xf32>
    %cst_128 = arith.constant dense<0.000000e+00> : vector<2x16xf32>
    %142 = tpu.matmul %141, %5, %cst_128 {dimension_numbers = #tpu.dot_dimension_numbers<[1], [1], [0], [0], [0, 0, 1, 0], [], []>} : vector<2x2048xf32>, vector<16x2048xf32>, vector<2x16xf32> -> vector<2x16xf32>
    %c0_129 = arith.constant 0 : index
    %c0_130 = arith.constant 0 : index
    %143 = vector.load %arg7[%c0_129, %c0_130] : memref<1x16xf32, #tpu.memory_space<vmem>>, vector<1x16xf32>
    %144 = vector.broadcast %143 : vector<1x16xf32> to vector<2x16xf32>
    %145 = arith.addf %142, %144 : vector<2x16xf32>
    %c0_131 = arith.constant 0 : index
    %c0_132 = arith.constant 0 : index
    %146 = vector.load %arg8[%c0_131, %c0_132] : memref<2x16xf32, #tpu.memory_space<vmem>>, vector<2x16xf32>
    tpu.vector_store %arg8[%c0_131, %c0_132], %145 {strides = array<i32>} : memref<2x16xf32, #tpu.memory_space<vmem>>, vector<2x16xf32>,
    return
  }
  func.func @transform_0(%arg0: i32) -> (i32, i32, i32) {
    %c0_i32 = arith.constant 0 : i32
    %c0_i32_0 = arith.constant 0 : i32
    %c0_i32_1 = arith.constant 0 : i32
    %c0_i32_2 = arith.constant 0 : i32
    return %c0_i32, %c0_i32_0, %c0_i32_1 : i32, i32, i32
  }
  func.func @transform_1(%arg0: i32) -> (i32, i32) {
    %c0_i32 = arith.constant 0 : i32
    %c0_i32_0 = arith.constant 0 : i32
    %c0_i32_1 = arith.constant 0 : i32
    return %c0_i32, %c0_i32_0 : i32, i32
  }
  func.func @transform_2(%arg0: i32) -> (i32, i32) {
    %c0_i32 = arith.constant 0 : i32
    %c0_i32_0 = arith.constant 0 : i32
    %c0_i32_1 = arith.constant 0 : i32
    return %c0_i32, %c0_i32_0 : i32, i32
  }
  func.func @transform_3(%arg0: i32) -> (i32, i32) {
    %c0_i32 = arith.constant 0 : i32
    %c0_i32_0 = arith.constant 0 : i32
    %c0_i32_1 = arith.constant 0 : i32
    return %c0_i32, %c0_i32_0 : i32, i32
  }
  func.func @transform_4(%arg0: i32) -> (i32, i32) {
    %c0_i32 = arith.constant 0 : i32
    %c0_i32_0 = arith.constant 0 : i32
    %c0_i32_1 = arith.constant 0 : i32
    return %c0_i32, %c0_i32_0 : i32, i32
  }
  func.func @transform_5(%arg0: i32) -> (i32, i32) {
    %c0_i32 = arith.constant 0 : i32
    %c0_i32_0 = arith.constant 0 : i32
    %c0_i32_1 = arith.constant 0 : i32
    return %c0_i32, %c0_i32_0 : i32, i32
  }
  func.func @transform_6(%arg0: i32) -> (i32, i32) {
    %c0_i32 = arith.constant 0 : i32
    %c0_i32_0 = arith.constant 0 : i32
    %c0_i32_1 = arith.constant 0 : i32
    return %c0_i32, %c0_i32_0 : i32, i32
  }
  func.func @transform_7(%arg0: i32) -> (i32, i32) {
    %c0_i32 = arith.constant 0 : i32
    %c0_i32_0 = arith.constant 0 : i32
    %c0_i32_1 = arith.constant 0 : i32
    return %c0_i32, %c0_i32_0 : i32, i32
  }
}

</mosaic_0001>

<bundles_post_ra>
// kernel: pruned_model_forward.1
= control target key start
LH: loop header
LB: loop body
LE: loop exit
PB: predicated region body
PF: predicated region fallthrough
CT: control target
= control target key end

     0   :  { %12 = vsyncpa [#allocation6], 0  ;;  %s2029_s0 = inlined_call_operand.vmem [shape: f32[2,4,256], index: 0, kind: input, shape index: {}]   ;;  %s2030_s1 = inlined_call_operand.vmem [shape: f32[8,36], index: 1, kind: input, shape index: {}]   ;;  %s2031_s2 = inlined_call_operand.vmem [shape: f32[8,36], index: 2, kind: input, shape index: {}]   ;;  %s2032_s3 = inlined_call_operand.vmem [shape: f32[8,1], index: 3, kind: input, shape index: {}]   ;;  %s2033_s4 = inlined_call_operand.vmem [shape: f32[16,2048], index: 4, kind: input, shape index: {}]   ;;  %s2034_s5 = inlined_call_operand.hbm [shape: f32[16,2048], index: 5, kind: input, shape index: {}]   ;;  %s2035_s6 = inlined_call_operand.vmem [shape: f32[1,16], index: 6, kind: input, shape index: {}]   ;;  %s2036_s7 = inlined_call_operand.hbm [shape: f32[2,16], index: 7, kind: output, shape index: {}]  }
   0x1   :  { %13 = vsyncpa [#allocation7], 0  ;;  %s1632_s24 = smov [#allocation5]  }
   0x2   :  { %s29_s25 = sshll.u32 %s1632_s24, 4  ;;  %s30_s25 = int_to_ptr.vmem [resolvable:$true] %s29_s25 }
   0x3   :  { %s1596_s26 = scalar_lea.vmem %s30_s25, 4096  ;;  %p1601_p1 = scmp.lt.s32.totalorder %s30_s25, %s30_s25 }
   0x4   :  { %p1597_p0 = scmp.ne.s32.totalorder %s30_s25, %s1596_s26  ;;  %p1602_p2 = scmp.lt.s32.totalorder %s1596_s26, %s1596_s26 }
   0x6   :  { %p1603_p3 = por %p1602_p2, %p1601_p1 }
   0x8   :  { %p1604_p4 = pnand %p1603_p3, %p1597_p0 }
   0xa   :  { %1607 = shalt.err (!%p1604_p4)
}
   0xb   :  { %s1633_s27 = smov 2048   ;;  %s1634_s28 = smov 128  }
   0xc   :  { %35 = dma.hbm_to_vmem [thread:$0]  %s2034_s5, 4096, %s30_s25, [#allocation6], %s1633_s27, %s1633_s27, %s1634_s28  }
   0xd   :  { %1628 = dma.done.wait [#allocation6], 4096  }
   0xe   :  { %1629 = vsyncadd [#allocation6], 4294963200  ;;  %v1635_v0 = vmov 0.0   ;;  %v173_v1 = vld [vmem:[%s2029_s0] sm:$0xff]  ;;  %s1636_s10 = smov 111   ;;  %s1637_s5 = smov 127   ;;  %v140_v32 = vlaneseq }
   0xf   :  { %172 = vst [vmem:[#allocation2 + $0x8] sm:$0xff] %v1635_v0  ;;  %171 = vst [vmem:[#allocation2] sm:$0xff] %v1635_v0  ;;  %442 = vmatprep.mubr.f32.mxu0 %v1635_v0  ;;  %787 = vmatprep.mubr.f32.mxu1 %v1635_v0  ;;  %v335_v3 = vcombine.high %v173_v1, %v173_v1  ;;  %v1701_v8 = vld [vmem:[%s2029_s0 + $0x8] sm:$0xff]  ;;  %s1638_s13 = smov 112   ;;  %s1639_s14 = smov 113   ;;  %v316_v14 = vcombine.low %v173_v1, %v173_v1  ;;  %v1644_v30 = vmov 0  }
  0x10   :  { %174 = vst [vmem:[#allocation2 + $0x4] sm:$0xff] %v173_v1  ;;  %336 = vrot.lane.b32.xlu1 %v173_v1, %s1636_s10  ;;  %264 = vst [vmem:[#allocation3 + $0x48] sm:$0xf] %v173_v1  ;;  %s1640_s0 = smov 1   ;;  %s1641_s15 = smov 15   ;;  %v1722_v15 = vcombine.high %v1701_v8, %v1701_v8  ;;  %v668_v24 = vcombine.low %v1701_v8, %v1701_v8  ;;  %1572 = vset.pattern.permute.xlu0 %v1644_v30  ;;  %v711_v31 = vld [vmem:[%s2032_s3] sm:$0xff] }
  0x11   :  { %265 = vst [vmem:[#allocation3 + $0x28] sm:$0xf] %v335_v3  ;;  %s1642_s16 = smov 17   ;;  %s1643_s17 = smov 16   ;;  %1573 = vset.pattern.permute.xlu1 %v1644_v30  ;;  %v141_v33 = vand.u32 127, %v140_v32  ;;  %vm277_vm0 = vcmask 1039360  }
  0x12   :  { %vm342_vm3 = vcmask 908288   ;;  %vm303_vm4 = vcmask 924672   ;;  %vm324_vm7 = vcmask 916480   ;;  %vm245_vm8 = vcmask 7168   ;;  %v61_v53 = vld [vmem:[%s2033_s4 + $0x88] sm:$0xff]  ;;  %s1647_s30 = smov [#allocation8]  }
  0x13   :  { %v142_v36 = vadd.s32 128, %v141_v33  ;;  %v147_v39 = vand.u32 15, %v141_v33  ;;  %vm371_vm9 = vcmask 1043456   ;;  %vm225_vm10 = vcmask 121856   ;;  %s1539_s8 = sshll.u32 %s1647_s30, 4  ;;  %s1540_s8 = int_to_ptr.vmem [resolvable:$true] %s1539_s8 }
  0x14   :  { %271 = vrot.lane.b32.xlu1 %v173_v1, %s1637_s5  ;;  %vm186_vm11 = vcmask 138240   ;;  %vm207_vm12 = vcmask 130048   ;;  %vm367_vm13 = vcmask 293888   ;;  %vm1911_vm14 = vcmp.lt.s32.totalorder %v140_v32, 256  ;;  %p1613_p6 = scmp.lt.s32.totalorder %s1540_s8, %s1540_s8 }
  0x15   :  { %v154_v40 = vand.u32 15, %v142_v36  ;;  %vm1765_vm1 = vcmp.lt.s32.totalorder %v147_v39, 15  ;;  %vm1779_vm5 = vcmp.ge.s32.totalorder %v147_v39, 1  ;;  %vm1531_vm15 = vcmask 123904  }
  0x16   :  { %v332_v2 = vld [vmem:[#allocation2 + $0xc] sm:$0xf] }
  0x17   :  { %340 = vrot.lane.b32.xlu0 %v332_v2, %s1636_s10  ;;  %v267_v4 = vld [vmem:[#allocation2 + $0xc] sm:$0xf]  ;;  %v176_v6 = vld [vmem:[#allocation2 + $0x8] sm:$0xf]  ;;  %v195_v7 = vld [vmem:[#allocation2] sm:$0xff]  ;;  %vm1769_vm2 = vcmp.lt.s32.totalorder %v154_v40, 15 }
  0x18   :  { %v293_v5 = vld [vmem:[#allocation2 + $0xc] sm:$0xf]  ;;  %v196_v9 = vld [vmem:[#allocation2 + $0x8] sm:$0xf]  ;;  %320 = vrot.lane.b32.xlu1 %v173_v1, %s1638_s13  ;;  %v238_v12 = vcombine.high %v195_v7, %v195_v7  ;;  %v199_v18 = vcombine.low %v195_v7, %v195_v7  ;;  %vm1783_vm6 = vcmp.ge.s32.totalorder %v154_v40, 1 }
  0x19   :  { %v235_v10 = vld [vmem:[#allocation2 + $0x8] sm:$0xf]  ;;  %v1575_v13 = vld [vmem:[#allocation2 + $0xc] ss:$0 sps:$4 sm:$0xff]   ;;  %v200_v17 = vcombine.low %v196_v9, %v196_v9 }
  0x1a   :  { %v215_v11 = vld [vmem:[#allocation2 + $0x8] sm:$0xf]  ;;  %v683_v16 = vld [vmem:[#allocation2 + $0xc] sm:$0xf] }
  0x1b   :  { %275 = vrot.lane.b32.xlu0 %v267_v4, %s1637_s5  ;;  %532 = vst [vmem:[#allocation2 + $0x4] sm:$0xff] %v1701_v8  ;;  %v621_v19 = vld [vmem:[#allocation2 + $0xc] sm:$0xf] }
  0x1c   :  { %273 = vrot.lane.b32.xlu1 %v335_v3, %s1637_s5  ;;  %v646_v20 = vld [vmem:[#allocation2 + $0xc] sm:$0xf] }
  0x1d   :  { %v1579_v23 = vld [vmem:[#allocation2 + $0xc] ss:$0 sps:$4 sm:$0xff]  }
  0x1f   :  { %301 = vrot.lane.b32.xlu0 %v293_v5, %s1639_s14 }
  0x20   :  { %299 = vrot.lane.b32.xlu1 %v335_v3, %s1639_s14 }
  0x22   :  { %v589_v21 = vld [vmem:[#allocation2] sm:$0xff]  ;;  %v590_v25 = vld [vmem:[#allocation2 + $0x8] sm:$0xf] }
  0x23   :  { %297 = vrot.lane.b32.xlu0 %v173_v1, %s1639_s14  ;;  %v593_v22 = vcombine.high %v589_v21, %v589_v21  ;;  %v571_v26 = vld [vmem:[#allocation2 + $0x8] sm:$0xf]  ;;  %v556_v28 = vcombine.low %v589_v21, %v589_v21 }
  0x24   :  { %241 = vrot.lane.b32.xlu1 %v238_v12, %s1640_s0  ;;  %v534_v27 = vld [vmem:[#allocation2 + $0x8] sm:$0xf] }
  0x25   :  { %v1583_v29 = vld [vmem:[#allocation2 + $0x8] ss:$0 sps:$4 sm:$0xff]  }
  0x27   :  { %338 = vrot.lane.b32.xlu0 %v335_v3, %s1636_s10 }
  0x28   :  { %318 = vrot.lane.b32.xlu1 %v316_v14, %s1638_s13 }
  0x2b   :  { %322 = vrot.lane.b32.xlu0 %v1575_v13, %s1638_s13 }
  0x2c   :  { %221 = vrot.lane.b32.xlu1 %v238_v12, %s1641_s15 }
  0x2f   :  { %243 = vrot.lane.b32.xlu0 %v235_v10, %s1640_s0 }
  0x30   :  { %219 = vrot.lane.b32.xlu1 %v195_v7, %s1641_s15 }
  0x33   :  { %239 = vrot.lane.b32.xlu0 %v195_v7, %s1640_s0 }
  0x34   :  { %184 = vrot.lane.b32.xlu1 %v176_v6, %s1642_s16 }
  0x37   :  { %223 = vrot.lane.b32.xlu0 %v215_v11, %s1641_s15 }
  0x38   :  { %691 = vrot.lane.b32.xlu1 %v683_v16, %s1636_s10 }
  0x3b   :  { %182 = vrot.lane.b32.xlu0 %v238_v12, %s1642_s16 }
  0x3c   :  { %203 = vrot.lane.b32.xlu1 %v195_v7, %s1643_s17 }
  0x3f   :  { %689 = vrot.lane.b32.xlu0 %v1722_v15, %s1636_s10 }
  0x40   :  { %687 = vrot.lane.b32.xlu1 %v1701_v8, %s1636_s10 }
  0x43   :  { %180 = vrot.lane.b32.xlu0 %v195_v7, %s1642_s16 }
  0x44   :  { %627 = vrot.lane.b32.xlu1 %v1722_v15, %s1637_s5 }
  0x47   :  { %205 = vrot.lane.b32.xlu0 %v200_v17, %s1643_s17 }
  0x48   :  { %652 = vrot.lane.b32.xlu1 %v1722_v15, %s1639_s14 }
  0x4b   :  { %201 = vrot.lane.b32.xlu0 %v199_v18, %s1643_s17 }
  0x4c   :  { %625 = vrot.lane.b32.xlu1 %v1701_v8, %s1637_s5 }
  0x4f   :  { %629 = vrot.lane.b32.xlu0 %v621_v19, %s1637_s5 }
  0x50   :  { %672 = vrot.lane.b32.xlu1 %v1701_v8, %s1638_s13 }
  0x53   :  { %654 = vrot.lane.b32.xlu0 %v646_v20, %s1639_s14 }
  0x54   :  { %596 = vrot.lane.b32.xlu1 %v593_v22, %s1640_s0 }
  0x57   :  { %650 = vrot.lane.b32.xlu0 %v1701_v8, %s1639_s14 }
  0x58   :  { %670 = vrot.lane.b32.xlu1 %v668_v24, %s1638_s13 }
  0x5b   :  { %674 = vrot.lane.b32.xlu0 %v1579_v23, %s1638_s13 }
  0x5c   :  { %577 = vrot.lane.b32.xlu1 %v593_v22, %s1641_s15 }
  0x5f   :  { %598 = vrot.lane.b32.xlu0 %v590_v25, %s1640_s0 }
  0x60   :  { %575 = vrot.lane.b32.xlu1 %v589_v21, %s1641_s15 }
  0x63   :  { %594 = vrot.lane.b32.xlu0 %v589_v21, %s1640_s0 }
  0x64   :  { %542 = vrot.lane.b32.xlu1 %v534_v27, %s1642_s16 }
  0x67   :  { %579 = vrot.lane.b32.xlu0 %v571_v26, %s1641_s15 }
  0x68   :  { %560 = vrot.lane.b32.xlu1 %v589_v21, %s1643_s17 }
  0x6b   :  { %540 = vrot.lane.b32.xlu0 %v593_v22, %s1642_s16 }
  0x6c   :  { %558 = vrot.lane.b32.xlu1 %v556_v28, %s1643_s17 }
  0x6f   :  { %538 = vrot.lane.b32.xlu0 %v589_v21, %s1642_s16 }
  0x70   :  { %714 = vperm.xlu1 %1573, %v711_v31  }
  0x73   :  { %562 = vrot.lane.b32.xlu0 %v1583_v29, %s1643_s17 }
  0x77   :  { %364 = vperm.xlu0 %1572, %v711_v31  }
  0x82   :  { %v337_v34 = vpop.permute.xlu1 %336 }
  0x86   :  { %v272_v37 = vpop.permute.xlu1 %271 }
  0x89   :  { %v341_v35 = vpop.permute.xlu0 %340 }
  0x8a   :  { %v321_v41 = vpop.permute.xlu1 %320 }
  0x8d   :  { %v276_v38 = vpop.permute.xlu0 %275 }
  0x8e   :  { %v274_v45 = vpop.permute.xlu1 %273 }
  0x8f   :  { %v278_v47 = vsel %vm277_vm0, %v272_v37, %v274_v45  ;;  %v279_v48 = vsel %vm277_vm0, %v274_v45, %v276_v38 }
  0x90   :  { %v282_v49 = vsel %vm1765_vm1, %v278_v47, 0.0  ;;  %v283_v50 = vsel %vm1769_vm2, %v279_v48, 0.0 }
  0x91   :  { %v302_v42 = vpop.permute.xlu0 %301  ;;  %v286_v51 = vrot.slane %v282_v49, 4  ;;  %v287_v52 = vrot.slane %v283_v50, 4 }
  0x92   :  { %v300_v55 = vpop.permute.xlu1 %299 }
  0x93   :  { %290 = vst [vmem:[#allocation3 + $0x48] sm:$0xf0] %v286_v51  ;;  %291 = vst [vmem:[#allocation3 + $0x28] sm:$0xf0] %v287_v52  ;;  %v305_v58 = vsel %vm303_vm4, %v300_v55, %v302_v42 }
  0x94   :  { %v309_v62 = vsel %vm1783_vm6, %v305_v58, 0.0  ;;  %v42_v58 = vld [vmem:[%s2031_s2] sm:$0xff] }
  0x95   :  { %v298_v46 = vpop.permute.xlu0 %297  ;;  %311 = vst [vmem:[#allocation3 + $0x20] sm:$0xf] %v309_v62 }
  0x96   :  { %v304_v57 = vsel %vm303_vm4, %v298_v46, %v300_v55  ;;  %v242_v1 = vpop.permute.xlu1 %241 }
  0x97   :  { %v308_v61 = vsel %vm1779_vm5, %v304_v57, 0.0  ;;  %v41_v57 = vld [vmem:[%s2030_s1] sm:$0xff] }
  0x98   :  { %310 = vst [vmem:[#allocation3 + $0x8] sm:$0xf] %v308_v61 }
  0x99   :  { %v339_v56 = vpop.permute.xlu0 %338 }
  0x9a   :  { %v343_v59 = vsel %vm342_vm3, %v337_v34, %v339_v56  ;;  %v344_v60 = vsel %vm342_vm3, %v339_v56, %v341_v35  ;;  %v319_v4 = vpop.permute.xlu1 %318  ;;  %v356_v5 = vld [vmem:[#allocation3 + $0x28] sm:$0xff] }
  0x9b   :  { %v347_v63 = vsel %vm1765_vm1, %v343_v59, 0.0  ;;  %v348_v0 = vsel %vm1769_vm2, %v344_v60, 0.0  ;;  %v355_v6 = vld [vmem:[#allocation3 + $0x48] sm:$0xff]  ;;  %v325_v9 = vsel %vm324_vm7, %v319_v4, %v321_v41  ;;  %619 = vst [vmem:[#allocation3 + $0x28] sm:$0xf] %v1722_v15 }
  0x9c   :  { %349 = vst [vmem:[#allocation3 + $0x40] sm:$0xf] %v347_v63  ;;  %350 = vst [vmem:[#allocation3 + $0x38] sm:$0xf] %v348_v0 }
  0x9d   :  { %v323_v2 = vpop.permute.xlu0 %322  ;;  %618 = vst [vmem:[#allocation3 + $0x48] sm:$0xf] %v1701_v8  ;;  %329 = vst [vmem:[#allocation3 + $0x8] sm:$0xf0] %v325_v9 }
  0x9e   :  { %v326_v3 = vsel %vm324_vm7, %v321_v41, %v323_v2  ;;  %v222_v16 = vpop.permute.xlu1 %221 }
  0x9f   :  { %330 = vst [vmem:[#allocation3 + $0x20] sm:$0xf0] %v326_v3 }
  0xa1   :  { %v244_v7 = vpop.permute.xlu0 %243 }
  0xa2   :  { %v247_v10 = vsel %vm245_vm8, %v242_v1, %v244_v7  ;;  %v220_v20 = vpop.permute.xlu1 %219 }
  0xa3   :  { %v360_v11 = vld [vmem:[#allocation3 + $0x38] sm:$0xf]  ;;  %v251_v12 = vsel %vm1783_vm6, %v247_v10, 0.0  ;;  %v359_v13 = vld [vmem:[#allocation3 + $0x40] sm:$0xf]  ;;  %v226_v22 = vsel %vm225_vm10, %v220_v20, %v222_v16 }
  0xa4   :  { %1548 = vmatprep.subr.msk.mxu0 %vm371_vm9, %v360_v11  ;;  %v255_v14 = vrot.slane %v251_v12, 4  ;;  %v357_v23 = vld [vmem:[#allocation3 + $0x8] sm:$0xff]  ;;  %v230_v25 = vsel %vm1765_vm1, %v226_v22, 0.0 }
  0xa5   :  { %1549 = vmatpush1.msk.msra.mxu0 %vm371_vm9, %v359_v13  ;;  %v240_v17 = vpop.permute.xlu0 %239  ;;  %232 = vst [vmem:[#allocation3 + $0x18] sm:$0xf] %v230_v25 }
  0xa6   :  { %259 = vst [vmem:[#allocation3 + $0x10] sm:$0xf0] %v255_v14  ;;  %v246_v15 = vsel %vm245_vm8, %v240_v17, %v242_v1  ;;  %v358_v18 = vld [vmem:[#allocation3 + $0x20] sm:$0xff]  ;;  %v185_v27 = vpop.permute.xlu1 %184  ;;  %v1842_v1 = vmul.f32 %v42_v58, %v41_v57  ;;  %v60_v57 = vld [vmem:[%s2033_s4 + $0x80] sm:$0xff] }
  0xa7   :  { %v250_v8 = vsel %vm1779_vm5, %v246_v15, 0.0  ;;  %402 = vmatprep.subr.mxu0 %v358_v18  ;;  %v92_v58 = vld [vmem:[#allocation5 + $0x80] sm:$0xff] }
  0xa8   :  { %v254_v19 = vrot.slane %v250_v8, 4  ;;  %403 = vmatpush1.msra.mxu0 %v357_v23 }
  0xa9   :  { %v224_v21 = vpop.permute.xlu0 %223  ;;  %404 = vmatprep.subr.mxu0 %v356_v5 }
  0xaa   :  { %258 = vst [vmem:[#allocation3 + $0x18] sm:$0xf0] %v254_v19  ;;  %v227_v24 = vsel %vm225_vm10, %v222_v16, %v224_v21  ;;  %405 = vmatpush1.msra.mxu0 %v355_v6  ;;  %v692_v31 = vpop.permute.xlu1 %691 }
  0xab   :  { %v231_v26 = vsel %vm1769_vm2, %v227_v24, 0.0 }
  0xac   :  { %233 = vst [vmem:[#allocation3 + $0x10] sm:$0xf] %v231_v26 }
  0xad   :  { %v183_v28 = vpop.permute.xlu0 %182 }
  0xae   :  { %v188_v29 = vsel %vm186_vm11, %v183_v28, %v185_v27  ;;  %v204_v38 = vpop.permute.xlu1 %203 }
  0xaf   :  { %v192_v30 = vsel %vm1783_vm6, %v188_v29, 0.0 }
  0xb0   :  { %194 = vst [vmem:[#allocation3] sm:$0xf] %v192_v30 }
  0xb1   :  { %v690_v33 = vpop.permute.xlu0 %689  ;;  %v353_v37 = vld [vmem:[#allocation3 + $0x18] sm:$0xff] }
  0xb2   :  { %v694_v34 = vsel %vm342_vm3, %v690_v33, %v692_v31  ;;  %v688_v42 = vpop.permute.xlu1 %687 }
  0xb3   :  { %v354_v35 = vld [vmem:[#allocation3 + $0x10] sm:$0xff]  ;;  %v698_v36 = vsel %vm1769_vm2, %v694_v34, 0.0  ;;  %v693_v46 = vsel %vm342_vm3, %v688_v42, %v690_v33 }
  0xb4   :  { %406 = vmatprep.subr.mxu0 %v354_v35  ;;  %700 = vst [vmem:[#allocation3 + $0x38] sm:$0xf] %v698_v36  ;;  %v697_v48 = vsel %vm1765_vm1, %v693_v46, 0.0 }
  0xb5   :  { %v181_v39 = vpop.permute.xlu0 %180  ;;  %407 = vmatpush1.msra.mxu0 %v353_v37  ;;  %699 = vst [vmem:[#allocation3 + $0x40] sm:$0xf] %v697_v48 }
  0xb6   :  { %v187_v40 = vsel %vm186_vm11, %v181_v39, %v183_v28  ;;  %v628_v50 = vpop.permute.xlu1 %627 }
  0xb7   :  { %v191_v41 = vsel %vm1779_vm5, %v187_v40, 0.0 }
  0xb8   :  { %193 = vst [vmem:[#allocation3 + $0x30] sm:$0xf] %v191_v41 }
  0xb9   :  { %v206_v45 = vpop.permute.xlu0 %205 }
  0xba   :  { %v209_v47 = vsel %vm207_vm12, %v204_v38, %v206_v45  ;;  %v653_v55 = vpop.permute.xlu1 %652 }
  0xbb   :  { %213 = vst [vmem:[#allocation3] sm:$0xf0] %v209_v47  ;;  %v710_v49 = vld [vmem:[#allocation3 + $0x38] sm:$0xf] }
  0xbc   :  { %1552 = vmatprep.subr.msk.mxu1 %vm371_vm9, %v710_v49  ;;  %v709_v61 = vld [vmem:[#allocation3 + $0x40] sm:$0xf] }
  0xbd   :  { %v202_v51 = vpop.permute.xlu0 %201  ;;  %1553 = vmatpush1.msk.msra.mxu1 %vm371_vm9, %v709_v61  ;;  %v95_v61 = vld [vmem:[#allocation5 + $0x98] sm:$0xff] }
  0xbe   :  { %v208_v52 = vsel %vm207_vm12, %v202_v51, %v204_v38  ;;  %v626_v0 = vpop.permute.xlu1 %625 }
  0xbf   :  { %212 = vst [vmem:[#allocation3 + $0x30] sm:$0xf0] %v208_v52  ;;  %v631_v3 = vsel %vm277_vm0, %v626_v0, %v628_v50 }
  0xc0   :  { %v635_v6 = vsel %vm1765_vm1, %v631_v3, 0.0  ;;  %v77_v3 = vld [vmem:[#allocation5 + $0x8] sm:$0xff] }
  0xc1   :  { %v630_v56 = vpop.permute.xlu0 %629  ;;  %v639_v9 = vrot.slane %v635_v6, 4  ;;  %v76_v6 = vld [vmem:[#allocation5] sm:$0xff] }
  0xc2   :  { %v632_v59 = vsel %vm277_vm0, %v628_v50, %v630_v56  ;;  %v352_v60 = vld [vmem:[#allocation3] sm:$0xff]  ;;  %v673_v10 = vpop.permute.xlu1 %672 }
  0xc3   :  { %v636_v62 = vsel %vm1769_vm2, %v632_v59, 0.0  ;;  %408 = vmatprep.subr.mxu0 %v352_v60  ;;  %643 = vst [vmem:[#allocation3 + $0x48] sm:$0xf0] %v639_v9  ;;  %v63_v59 = vld [vmem:[%s2033_s4 + $0x98] sm:$0xff]  ;;  %v124_v60 = vmul.f32 %v92_v58, %v60_v57  ;;  %v1646_v58 = vmov 1983009808  }
  0xc4   :  { %v640_v63 = vrot.slane %v636_v62, 4  ;;  %v62_v62 = vld [vmem:[%s2033_s4 + $0x90] sm:$0xff]  ;;  %v127_v0 = vmul.f32 %v95_v61, %v63_v59  ;;  %v79_v9 = vld [vmem:[#allocation5 + $0x18] sm:$0xff]  ;;  %v889_v59 = vunpack.c.l.s4 %v1646_v58  ;;  %v52_v58 = vld [vmem:[%s2033_s4 + $0x40] sm:$0xff] }
  0xc5   :  { %v655_v2 = vpop.permute.xlu0 %654 }
  0xc6   :  { %644 = vst [vmem:[#allocation3 + $0x28] sm:$0xf0] %v640_v63  ;;  %v351_v4 = vld [vmem:[#allocation3 + $0x30] sm:$0xff]  ;;  %v657_v5 = vsel %vm303_vm4, %v653_v55, %v655_v2  ;;  %v597_v14 = vpop.permute.xlu1 %596  ;;  %v94_v63 = vld [vmem:[#allocation5 + $0x90] sm:$0xff]  ;;  %v45_v2 = vld [vmem:[%s2033_s4 + $0x8] sm:$0xff] }
  0xc7   :  { %409 = vmatpush1.msra.mxu0 %v351_v4  ;;  %v661_v7 = vsel %vm1783_vm6, %v657_v5, 0.0  ;;  %v44_v4 = vld [vmem:[%s2033_s4] sm:$0xff]  ;;  %v109_v5 = vmul.f32 %v77_v3, %v45_v2 }
  0xc8   :  { %663 = vst [vmem:[#allocation3 + $0x20] sm:$0xf] %v661_v7  ;;  %1550 = vmatmul.mubr.msk.f32.vlgmr.msra.gmra.mxu0 %vm367_vm13, %v1842_v1  ;;  %v47_v7 = vld [vmem:[%s2033_s4 + $0x18] sm:$0xff] }
  0xc9   :  { %v651_v11 = vpop.permute.xlu0 %650 }
  0xca   :  { %v656_v12 = vsel %vm303_vm4, %v651_v11, %v653_v55  ;;  %v671_v15 = vpop.permute.xlu1 %670  ;;  %v705_v37 = vld [vmem:[#allocation3 + $0x48] sm:$0xff]  ;;  %v93_v55 = vld [vmem:[#allocation5 + $0x88] sm:$0xff]  ;;  %v111_v11 = vmul.f32 %v79_v9, %v47_v7  ;;  %v64_v9 = vld [vmem:[%s2033_s4 + $0xa0] sm:$0xff] }
  0xcb   :  { %v660_v13 = vsel %vm1779_vm5, %v656_v12, 0.0  ;;  %v676_v8 = vsel %vm324_vm7, %v671_v15, %v673_v10  ;;  %v125_v56 = vmul.f32 %v93_v55, %v61_v53  ;;  %v46_v12 = vld [vmem:[%s2033_s4 + $0x10] sm:$0xff] }
  0xcc   :  { %662 = vst [vmem:[#allocation3 + $0x8] sm:$0xf] %v660_v13  ;;  %680 = vst [vmem:[#allocation3 + $0x8] sm:$0xf0] %v676_v8  ;;  %v78_v13 = vld [vmem:[#allocation5 + $0x10] sm:$0xff]  ;;  %v99_v8 = vld [vmem:[#allocation5 + $0xb8] sm:$0xff] }
  0xcd   :  { %v675_v16 = vpop.permute.xlu0 %674  ;;  %v706_v35 = vld [vmem:[#allocation3 + $0x28] sm:$0xff]  ;;  %999 = vmatprep.subr.mxu0 %v125_v56 }
  0xce   :  { %v677_v17 = vsel %vm324_vm7, %v673_v10, %v675_v16  ;;  %v578_v22 = vpop.permute.xlu1 %577  ;;  %1000 = vmatpush1.xpose.msra.mxu0 %v124_v60  ;;  %v108_v10 = vmul.f32 %v76_v6, %v44_v4  ;;  %v65_v16 = vld [vmem:[%s2033_s4 + $0xa8] sm:$0xff]  ;;  %v890_v4 = vunpack.c.0.s8 %v889_v59  ;;  %v84_v59 = vld [vmem:[#allocation5 + $0x40] sm:$0xff] }
  0xcf   :  { %681 = vst [vmem:[#allocation3 + $0x20] sm:$0xf0] %v677_v17  ;;  %1001 = vmatprep.subr.mxu0 %v109_v5  ;;  %v97_v17 = vld [vmem:[#allocation5 + $0xa8] sm:$0xff] }
  0xd0   :  { %v129_v15 = vmul.f32 %v97_v17, %v65_v16  ;;  %v98_v16 = vld [vmem:[#allocation5 + $0xb0] sm:$0xff] }
  0xd1   :  { %v599_v18 = vpop.permute.xlu0 %598 }
  0xd2   :  { %v601_v19 = vsel %vm245_vm8, %v597_v14, %v599_v18  ;;  %v576_v28 = vpop.permute.xlu1 %575  ;;  %1002 = vmatpush1.xpose.msra.mxu0 %v108_v10  ;;  %v67_v18 = vld [vmem:[%s2033_s4 + $0xb8] sm:$0xff]  ;;  %v96_v10 = vld [vmem:[#allocation5 + $0xa0] sm:$0xff] }
  0xd3   :  { %v605_v20 = vsel %vm1783_vm6, %v601_v19, 0.0  ;;  %v581_v30 = vsel %vm225_vm10, %v576_v28, %v578_v22  ;;  %v707_v31 = vld [vmem:[#allocation3 + $0x8] sm:$0xff]  ;;  %1139 = vmatprep.subr.mxu0 %v129_v15  ;;  %v131_v19 = vmul.f32 %v99_v8, %v67_v18  ;;  %v128_v17 = vmul.f32 %v96_v10, %v64_v9  ;;  %v49_v18 = vld [vmem:[%s2033_s4 + $0x28] sm:$0xff] }
  0xd4   :  { %v609_v21 = vrot.slane %v605_v20, 4  ;;  %v585_v34 = vsel %vm1765_vm1, %v581_v30, 0.0  ;;  %v1645_v20 = vmov 1966171168   ;;  %v81_v8 = vld [vmem:[#allocation5 + $0x28] sm:$0xff]  ;;  %v107_v9 = vld [vmem:[#allocation5 + $0xf8] sm:$0xff] }
  0xd5   :  { %v595_v23 = vpop.permute.xlu0 %594  ;;  %587 = vst [vmem:[#allocation3 + $0x18] sm:$0xf] %v585_v34 }
  0xd6   :  { %613 = vst [vmem:[#allocation3 + $0x10] sm:$0xf0] %v609_v21  ;;  %v600_v24 = vsel %vm245_vm8, %v595_v23, %v597_v14  ;;  %v708_v25 = vld [vmem:[#allocation3 + $0x20] sm:$0xff]  ;;  %v543_v38 = vpop.permute.xlu1 %542  ;;  %v110_v14 = vmul.f32 %v78_v13, %v46_v12  ;;  %v455_v21 = vunpack.c.l.s4 %v1645_v20 }
  0xd7   :  { %v604_v26 = vsel %vm1779_vm5, %v600_v24, 0.0  ;;  %747 = vmatprep.subr.mxu1 %v708_v25  ;;  %v458_v25 = vshrl.u32 %v140_v32, 7 }
  0xd8   :  { %v608_v27 = vrot.slane %v604_v26, 4  ;;  %748 = vmatpush1.msra.mxu1 %v707_v31  ;;  %v456_v24 = vunpack.c.0.s8 %v455_v21 }
  0xd9   :  { %v580_v29 = vpop.permute.xlu0 %579  ;;  %749 = vmatprep.subr.mxu1 %v706_v35  ;;  %v1947_v7 = vsub.s32 %v890_v4, %v458_v25 }
  0xda   :  { %612 = vst [vmem:[#allocation3 + $0x18] sm:$0xf0] %v608_v27  ;;  %v582_v33 = vsel %vm225_vm10, %v578_v22, %v580_v29  ;;  %750 = vmatpush1.msra.mxu1 %v705_v37  ;;  %v561_v43 = vpop.permute.xlu1 %560  ;;  %v459_v30 = vsub.s32 %v456_v24, %v458_v25  ;;  %v83_v24 = vld [vmem:[#allocation5 + $0x38] sm:$0xff]  ;;  %v50_v37 = vld [vmem:[%s2033_s4 + $0x30] sm:$0xff] }
  0xdb   :  { %v586_v36 = vsel %vm1769_vm2, %v582_v33, 0.0 }
  0xdc   :  { %588 = vst [vmem:[#allocation3 + $0x10] sm:$0xf] %v586_v36 }
  0xdd   :  { %v541_v39 = vpop.permute.xlu0 %540 }
  0xde   :  { %v545_v40 = vsel %vm186_vm11, %v541_v39, %v543_v38  ;;  %v559_v48 = vpop.permute.xlu1 %558 }
  0xdf   :  { %v549_v41 = vsel %vm1783_vm6, %v545_v40, 0.0  ;;  %v564_v50 = vsel %vm207_vm12, %v559_v48, %v561_v43 }
  0xe0   :  { %551 = vst [vmem:[#allocation3] sm:$0xf] %v549_v41  ;;  %568 = vst [vmem:[#allocation3 + $0x30] sm:$0xf0] %v564_v50 }
  0xe1   :  { %v539_v42 = vpop.permute.xlu0 %538  ;;  %v703_v47 = vld [vmem:[#allocation3 + $0x18] sm:$0xff] }
  0xe2   :  { %v544_v45 = vsel %vm186_vm11, %v539_v42, %v541_v39 }
  0xe3   :  { %v548_v44 = vsel %vm1779_vm5, %v544_v45, 0.0  ;;  %v704_v46 = vld [vmem:[#allocation3 + $0x10] sm:$0xff] }
  0xe4   :  { %550 = vst [vmem:[#allocation3 + $0x30] sm:$0xf] %v548_v44  ;;  %751 = vmatprep.subr.mxu1 %v704_v46 }
  0xe5   :  { %v563_v49 = vpop.permute.xlu0 %562  ;;  %752 = vmatpush1.msra.mxu1 %v703_v47 }
  0xe6   :  { %v565_v54 = vsel %vm207_vm12, %v561_v43, %v563_v49 }
  0xe7   :  { %569 = vst [vmem:[#allocation3] sm:$0xf0] %v565_v54 }
  0xeb   :  { %v701_v52 = vld [vmem:[#allocation3 + $0x30] sm:$0xff]  ;;  %v715_v47 = vpop.permute.xlu1 %714 }
  0xee   :  { %v702_v51 = vld [vmem:[#allocation3] sm:$0xff] }
  0xef   :  { %753 = vmatprep.subr.mxu1 %v702_v51 }
  0xf0   :  { %754 = vmatpush1.msra.mxu1 %v701_v52 }
  0xf1   :  { %1554 = vmatmul.mubr.msk.f32.vlgmr.msra.gmra.mxu1 %vm367_vm13, %v1842_v1  ;;  %v126_v1 = vmul.f32 %v94_v63, %v62_v62  ;;  %1069 = vmatprep.subr.mxu1 %v127_v0 }
  0xf2   :  { %v365_v22 = vpop.permute.xlu0 %364 }
  0xf3   :  { %1070 = vmatpush1.xpose.msra.mxu1 %v126_v1 }
  0xf4   :  { %1071 = vmatprep.subr.mxu1 %v111_v11 }
  0xf7   :  { %1072 = vmatpush1.xpose.msra.mxu1 %v110_v14  ;;  %v66_v14 = vld [vmem:[%s2033_s4 + $0xb0] sm:$0xff] }
  0xf8   :  { %1209 = vmatprep.subr.mxu1 %v131_v19  ;;  %v130_v25 = vmul.f32 %v98_v16, %v66_v14 }
 0x188   :  { %v444_v23 = vpop.f32.mrf.mxu0 }
 0x189   :  { %v445_v26 = vadd.f32 %v444_v23, %v365_v22  ;;  %v51_v23 = vld [vmem:[%s2033_s4 + $0x38] sm:$0xff] }
 0x18a   :  { %v446_v27 = vpop.f32.mrf.mxu0 }
 0x18b   :  { %v449_v28 = vmax.f32 %v445_v26, 0.0  ;;  %v447_v29 = vadd.f32 %v446_v27, %v365_v22  ;;  %v48_v26 = vld [vmem:[%s2033_s4 + $0x20] sm:$0xff] }
 0x18c   :  { %v80_v27 = vld [vmem:[#allocation5 + $0x20] sm:$0xff] }
 0x18d   :  { %v450_v31 = vmax.f32 %v447_v29, 0.0 }
 0x18f   :  { %v453_v33 = vcombine.low %v449_v28, %v450_v31  ;;  %v493_v34 = vcombine.high %v449_v28, %v450_v31  ;;  %v113_v31 = vmul.f32 %v81_v8, %v49_v18  ;;  %v74_v8 = vld [vmem:[%s2033_s4 + $0xf0] sm:$0xff] }
 0x191   :  { %v460_v35 = vrot.slane %v453_v33, %v459_v30  ;;  %v500_v36 = vrot.slane %v493_v34, %v459_v30  ;;  %v69_v34 = vld [vmem:[%s2033_s4 + $0xc8] sm:$0xff] }
 0x193   :  { %v467_v38 = vrot.slane %v460_v35, %v459_v30  ;;  %v474_v39 = vcombine.high %v460_v35, %v460_v35  ;;  %v507_v40 = vrot.slane %v500_v36, %v459_v30  ;;  %v511_v41 = vcombine.high %v500_v36, %v500_v36  ;;  %v101_v35 = vld [vmem:[#allocation5 + $0xc8] sm:$0xff] }
 0x194   :  { %v115_v36 = vmul.f32 %v83_v24, %v51_v23  ;;  %v91_v23 = vld [vmem:[#allocation5 + $0x78] sm:$0xff] }
 0x195   :  { %473 = vst.msk [vmem:[#allocation4] ss:$2 sm:$0x3] %vm1911_vm14, %v467_v38  ;;  %v481_v43 = vrot.slane %v474_v39, %v459_v30  ;;  %v485_v42 = vcombine.high %v467_v38, %v467_v38  ;;  %510 = vst.msk [vmem:[#allocation4 + $0x10] ss:$2 sm:$0x3] %vm1911_vm14, %v507_v40  ;;  %v518_v45 = vrot.slane %v511_v41, %v459_v30 }
 0x196   :  { %v522_v44 = vcombine.high %v507_v40, %v507_v40  ;;  %v82_v38 = vld [vmem:[#allocation5 + $0x30] sm:$0xff]  ;;  %v112_v40 = vmul.f32 %v80_v27, %v48_v26  ;;  %v71_v41 = vld [vmem:[%s2033_s4 + $0xd8] sm:$0xff]  ;;  %v88_v26 = vld [vmem:[#allocation5 + $0x60] sm:$0xff] }
 0x197   :  { %484 = vst.msk [vmem:[#allocation4 + $0x4] ss:$2 sm:$0x3] %vm1911_vm14, %v481_v43  ;;  %488 = vst.msk [vmem:[#allocation4 + $0x8] ss:$2 sm:$0x3] %vm1911_vm14, %v485_v42  ;;  %v489_v32 = vcombine.high %v481_v43, %v481_v43  ;;  %v526_v46 = vcombine.high %v518_v45, %v518_v45 }
 0x198   :  { %521 = vst.msk [vmem:[#allocation4 + $0x14] ss:$2 sm:$0x3] %vm1911_vm14, %v518_v45  ;;  %525 = vst.msk [vmem:[#allocation4 + $0x18] ss:$2 sm:$0x3] %vm1911_vm14, %v522_v44  ;;  %v133_v45 = vmul.f32 %v101_v35, %v69_v34 }
 0x199   :  { %492 = vst.msk [vmem:[#allocation4 + $0xc] ss:$2 sm:$0x3] %vm1911_vm14, %v489_v32  ;;  %529 = vst.msk [vmem:[#allocation4 + $0x1c] ss:$2 sm:$0x3] %vm1911_vm14, %v526_v46  ;;  %v114_v46 = vmul.f32 %v82_v38, %v50_v37 }
 0x19a   :  { %v103_v43 = vld [vmem:[#allocation5 + $0xd8] sm:$0xff]  ;;  %v68_v44 = vld [vmem:[%s2033_s4 + $0xc0] sm:$0xff] }
 0x19b   :  { %v100_v32 = vld [vmem:[#allocation5 + $0xc0] sm:$0xff] }
 0x19c   :  { %v1555_v38 = vld [vmem:[%s2035_s6] ss:$0 sm:$0xff]  ;;  %s1608_s6 = scalar_lea.vmem %s1540_s8, 32 }
 0x19d   :  { %p1609_p5 = scmp.ne.s32.totalorder %s1540_s8, %s1608_s6  ;;  %p1614_p7 = scmp.lt.s32.totalorder %s1608_s6, %s1608_s6 }
 0x19f   :  { %p1615_p8 = por %p1614_p7, %p1613_p6 }
 0x1a1   :  { %p1616_p9 = pnand %p1615_p8, %p1609_p5 }
 0x1b1   :  { %v789_v48 = vpop.f32.mrf.mxu1 }
 0x1b2   :  { %v790_v49 = vadd.f32 %v789_v48, %v715_v47  ;;  %v53_v48 = vld [vmem:[%s2033_s4 + $0x48] sm:$0xff] }
 0x1b3   :  { %v791_v50 = vpop.f32.mrf.mxu1 }
 0x1b4   :  { %v792_v54 = vadd.f32 %v791_v50, %v715_v47  ;;  %v794_v51 = vmax.f32 %v790_v49, 0.0  ;;  %v85_v49 = vld [vmem:[#allocation5 + $0x48] sm:$0xff]  ;;  %v135_v50 = vmul.f32 %v103_v43, %v71_v41 }
 0x1b6   :  { %v795_v52 = vmax.f32 %v792_v54, 0.0  ;;  %v70_v54 = vld [vmem:[%s2033_s4 + $0xd0] sm:$0xff] }
 0x1b8   :  { %v798_v53 = vcombine.low %v794_v51, %v795_v52  ;;  %v835_v55 = vcombine.high %v794_v51, %v795_v52  ;;  %v102_v51 = vld [vmem:[#allocation5 + $0xd0] sm:$0xff]  ;;  %v132_v52 = vmul.f32 %v100_v32, %v68_v44 }
 0x1ba   :  { %v805_v56 = vrot.slane %v798_v53, %v459_v30  ;;  %v842_v57 = vrot.slane %v835_v55, %v459_v30  ;;  %v55_v55 = vld [vmem:[%s2033_s4 + $0x58] sm:$0xff] }
 0x1bc   :  { %v812_v60 = vrot.slane %v805_v56, %v459_v30  ;;  %v816_v61 = vcombine.high %v805_v56, %v805_v56  ;;  %v849_v62 = vrot.slane %v842_v57, %v459_v30  ;;  %v853_v63 = vcombine.high %v842_v57, %v842_v57  ;;  %v87_v56 = vld [vmem:[#allocation5 + $0x58] sm:$0xff] }
 0x1bd   :  { %v117_v57 = vmul.f32 %v85_v49, %v53_v48 }
 0x1be   :  { %815 = vst.msk [vmem:[#allocation4 + $0x1] ss:$2 sm:$0x3] %vm1911_vm14, %v812_v60  ;;  %v823_v0 = vrot.slane %v816_v61, %v459_v30  ;;  %v827_v1 = vcombine.high %v812_v60, %v812_v60  ;;  %852 = vst.msk [vmem:[#allocation4 + $0x11] ss:$2 sm:$0x3] %vm1911_vm14, %v849_v62  ;;  %v860_v2 = vrot.slane %v853_v63, %v459_v30 }
 0x1bf   :  { %v864_v3 = vcombine.high %v849_v62, %v849_v62  ;;  %v134_v62 = vmul.f32 %v102_v51, %v70_v54  ;;  %v73_v63 = vld [vmem:[%s2033_s4 + $0xe8] sm:$0xff] }
 0x1c0   :  { %826 = vst.msk [vmem:[#allocation4 + $0x5] ss:$2 sm:$0x3] %vm1911_vm14, %v823_v0  ;;  %830 = vst.msk [vmem:[#allocation4 + $0x9] ss:$2 sm:$0x3] %vm1911_vm14, %v827_v1  ;;  %v831_v5 = vcombine.high %v823_v0, %v823_v0  ;;  %v868_v6 = vcombine.high %v860_v2, %v860_v2  ;;  %v119_v1 = vmul.f32 %v87_v56, %v55_v55 }
 0x1c1   :  { %863 = vst.msk [vmem:[#allocation4 + $0x15] ss:$2 sm:$0x3] %vm1911_vm14, %v860_v2  ;;  %867 = vst.msk [vmem:[#allocation4 + $0x19] ss:$2 sm:$0x3] %vm1911_vm14, %v864_v3 }
 0x1c2   :  { %834 = vst.msk [vmem:[#allocation4 + $0xd] ss:$2 sm:$0x3] %vm1911_vm14, %v831_v5  ;;  %871 = vst.msk [vmem:[#allocation4 + $0x1d] ss:$2 sm:$0x3] %vm1911_vm14, %v868_v6  ;;  %v116_v5 = vmul.f32 %v84_v59, %v52_v58 }
 0x1c3   :  { %v105_v0 = vld [vmem:[#allocation5 + $0xe8] sm:$0xff]  ;;  %v54_v2 = vld [vmem:[%s2033_s4 + $0x50] sm:$0xff]  ;;  %v75_v6 = vld [vmem:[%s2033_s4 + $0xf8] sm:$0xff] }
 0x1c4   :  { %v86_v3 = vld [vmem:[#allocation5 + $0x50] sm:$0xff]  ;;  %v139_v18 = vmul.f32 %v107_v9, %v75_v6 }
 0x1c5   :  { %v118_v14 = vmul.f32 %v86_v3, %v54_v2 }
 0x1c7   :  { %v872_v11 = vld [vmem:[#allocation4] sm:$0xff] }
 0x1c8   :  { %v894_v12 = vrot.slane %v872_v11, %v1947_v7  ;;  %v887_v13 = vcombine.high %v872_v11, %v872_v11  ;;  %v874_v28 = vld [vmem:[#allocation4 + $0x10] sm:$0xff]  ;;  %v137_v11 = vmul.f32 %v105_v0, %v73_v63 }
 0x1c9   :  { %v873_v15 = vld [vmem:[#allocation4 + $0x8] sm:$0xff]  ;;  %v921_v42 = vcombine.high %v874_v28, %v874_v28  ;;  %v928_v47 = vrot.slane %v874_v28, %v1947_v7  ;;  %v875_v60 = vld [vmem:[#allocation4 + $0x18] sm:$0xff] }
 0x1ca   :  { %v902_v19 = vcombine.high %v894_v12, %v894_v12  ;;  %v901_v20 = vrot.slane %v887_v13, %v1947_v7  ;;  %v911_v21 = vrot.slane %v873_v15, %v1947_v7  ;;  %v904_v22 = vcombine.high %v873_v15, %v873_v15  ;;  %v104_v13 = vld [vmem:[#allocation5 + $0xe0] sm:$0xff]  ;;  %v89_v15 = vld [vmem:[#allocation5 + $0x68] sm:$0xff] }
 0x1cb   :  { %v935_v53 = vrot.slane %v921_v42, %v1947_v7  ;;  %v936_v61 = vcombine.high %v928_v47, %v928_v47  ;;  %v938_v10 = vcombine.high %v875_v60, %v875_v60  ;;  %v945_v16 = vrot.slane %v875_v60, %v1947_v7 }
 0x1cc   :  { %1035 = vmatprep.mubr.f32.mxu0 %v902_v19  ;;  %v903_v29 = vcombine.high %v901_v20, %v901_v20  ;;  %v919_v30 = vcombine.high %v911_v21, %v911_v21  ;;  %v918_v33 = vrot.slane %v904_v22, %v1947_v7  ;;  %v106_v19 = vld [vmem:[#allocation5 + $0xf0] sm:$0xff]  ;;  %v59_v22 = vld [vmem:[%s2033_s4 + $0x78] sm:$0xff] }
 0x1cd   :  { %1036 = vmatmul.mubr.f32.vlgmr.msra.gmra.mxu0 %v894_v12  ;;  %v937_v4 = vcombine.high %v935_v53, %v935_v53  ;;  %v72_v12 = vld [vmem:[%s2033_s4 + $0xe0] sm:$0xff]  ;;  %v953_v27 = vcombine.high %v945_v16, %v945_v16  ;;  %v138_v28 = vmul.f32 %v106_v19, %v74_v8 }
 0x1ce   :  { %1140 = vmatpush1.xpose.msra.mxu0 %v128_v17  ;;  %1105 = vmatprep.mubr.f32.mxu1 %v903_v29  ;;  %v920_v39 = vcombine.high %v918_v33, %v918_v33  ;;  %v57_v17 = vld [vmem:[%s2033_s4 + $0x68] sm:$0xff]  ;;  %v123_v29 = vmul.f32 %v91_v23, %v59_v22 }
 0x1cf   :  { %1175 = vmatprep.mubr.f32.mxu0 %v919_v30  ;;  %1106 = vmatmul.mubr.f32.vlgmr.msra.gmra.mxu1 %v901_v20  ;;  %v136_v20 = vmul.f32 %v104_v13, %v72_v12  ;;  %v121_v24 = vmul.f32 %v89_v15, %v57_v17  ;;  %v90_v30 = vld [vmem:[#allocation5 + $0x70] sm:$0xff] }
 0x1d0   :  { %1210 = vmatpush1.xpose.msra.mxu1 %v130_v25  ;;  %1141 = vmatprep.subr.mxu0 %v113_v31  ;;  %v56_v25 = vld [vmem:[%s2033_s4 + $0x60] sm:$0xff] }
 0x1d1   :  { %1245 = vmatprep.mubr.f32.mxu1 %v920_v39  ;;  %1211 = vmatprep.subr.mxu1 %v115_v36 }
 0x1d2   :  { %1142 = vmatpush1.xpose.msra.mxu0 %v112_v40 }
 0x1d3   :  { %1279 = vmatprep.subr.mxu0 %v133_v45 }
 0x1d4   :  { %1212 = vmatpush1.xpose.msra.mxu1 %v114_v46 }
 0x1d5   :  { %1176 = vmatmul.mubr.f32.vlgmr.msra.gmra.mxu0 %v911_v21  ;;  %1349 = vmatprep.subr.mxu1 %v135_v50  ;;  %v952_v21 = vrot.slane %v938_v10, %v1947_v7  ;;  %v58_v7 = vld [vmem:[%s2033_s4 + $0x70] sm:$0xff] }
 0x1d6   :  { %1280 = vmatpush1.xpose.msra.mxu0 %v132_v52  ;;  %1315 = vmatprep.mubr.f32.mxu0 %v936_v61  ;;  %v122_v34 = vmul.f32 %v90_v30, %v58_v7 }
 0x1d7   :  { %1246 = vmatmul.mubr.f32.vlgmr.msra.gmra.mxu1 %v918_v33  ;;  %1281 = vmatprep.subr.mxu0 %v117_v57  ;;  %v954_v31 = vcombine.high %v952_v21, %v952_v21  ;;  %v120_v33 = vmul.f32 %v88_v26, %v56_v25 }
 0x1d8   :  { %1350 = vmatpush1.xpose.msra.mxu1 %v134_v62  ;;  %1385 = vmatprep.mubr.f32.mxu1 %v937_v4 }
 0x1d9   :  { %1351 = vmatprep.subr.mxu1 %v119_v1 }
 0x1da   :  { %1282 = vmatpush1.xpose.msra.mxu0 %v116_v5 }
 0x1db   :  { %1419 = vmatprep.subr.mxu0 %v137_v11 }
 0x1dc   :  { %1352 = vmatpush1.xpose.msra.mxu1 %v118_v14 }
 0x1dd   :  { %1316 = vmatmul.mubr.f32.vlgmr.msra.gmra.mxu0 %v928_v47  ;;  %1489 = vmatprep.subr.mxu1 %v139_v18 }
 0x1de   :  { %1420 = vmatpush1.xpose.msra.mxu0 %v136_v20  ;;  %1455 = vmatprep.mubr.f32.mxu0 %v953_v27 }
 0x1df   :  { %1386 = vmatmul.mubr.f32.vlgmr.msra.gmra.mxu1 %v935_v53  ;;  %1421 = vmatprep.subr.mxu0 %v121_v24 }
 0x1e0   :  { %1490 = vmatpush1.xpose.msra.mxu1 %v138_v28  ;;  %1525 = vmatprep.mubr.f32.mxu1 %v954_v31 }
 0x1e1   :  { %1491 = vmatprep.subr.mxu1 %v123_v29 }
 0x1e2   :  { %1422 = vmatpush1.xpose.msra.mxu0 %v120_v33 }
 0x1e4   :  { %1492 = vmatpush1.xpose.msra.mxu1 %v122_v34 }
 0x1e5   :  { %1456 = vmatmul.mubr.f32.vlgmr.msra.gmra.mxu0 %v945_v16 }
 0x1e7   :  { %1526 = vmatmul.mubr.f32.vlgmr.msra.gmra.mxu1 %v952_v21 }
 0x28d   :  { %v1037_v35 = vpop.f32.mrf.mxu0 }
 0x28e   :  { %v1038_v40 = vadd.f32 %v1555_v38, %v1037_v35 }
 0x28f   :  { %v1039_v36 = vpop.f32.mrf.mxu0  ;;  %v1107_v37 = vpop.f32.mrf.mxu1 }
 0x290   :  { %v1108_v45 = vadd.f32 %v1107_v37, %v1038_v40 }
 0x291   :  { %v1109_v39 = vpop.f32.mrf.mxu1 }
 0x295   :  { %v1177_v41 = vpop.f32.mrf.mxu0 }
 0x296   :  { %v1178_v32 = vadd.f32 %v1177_v41, %v1108_v45 }
 0x297   :  { %v1179_v43 = vpop.f32.mrf.mxu0  ;;  %v1247_v42 = vpop.f32.mrf.mxu1 }
 0x298   :  { %v1248_v47 = vadd.f32 %v1247_v42, %v1178_v32 }
 0x299   :  { %v1249_v44 = vpop.f32.mrf.mxu1 }
 0x29d   :  { %v1317_v46 = vpop.f32.mrf.mxu0 }
 0x29e   :  { %v1318_v50 = vadd.f32 %v1317_v46, %v1248_v47 }
 0x29f   :  { %v1319_v48 = vpop.f32.mrf.mxu0  ;;  %v1387_v49 = vpop.f32.mrf.mxu1 }
 0x2a0   :  { %v1388_v51 = vadd.f32 %v1387_v49, %v1318_v50 }
 0x2a1   :  { %v1389_v54 = vpop.f32.mrf.mxu1 }
 0x2a5   :  { %v1457_v52 = vpop.f32.mrf.mxu0 }
 0x2a6   :  { %v1458_v53 = vadd.f32 %v1457_v52, %v1388_v51 }
 0x2a7   :  { %v1459_v55 = vpop.f32.mrf.mxu0  ;;  %v1527_v56 = vpop.f32.mrf.mxu1 }
 0x2a8   :  { %v1528_v57 = vadd.f32 %v1527_v56, %v1458_v53 }
 0x2a9   :  { %v1529_v58 = vpop.f32.mrf.mxu1 }
 0x2aa   :  { %1532 = vst.msk [vmem:[#allocation8] sm:$0x3] %vm1531_vm15, %v1528_v57 }
 0x2ab   :  { %1619 = shalt.err (!%p1616_p9)
}
 0x2ac   :  { %1542 = dma.vmem_to_hbm [thread:$0]  %s1540_s8, 32, %s2036_s7, [#allocation7]  }
 0x2ad   :  { %1630 = dma.done.wait [#allocation7], 32  }
 0x2ae   :  { %1631 = vsyncadd [#allocation7], 4294967264 }
 0x2af   :  { %1546 = vsyncpa [#allocation6], 1 }
 0x2b0   :  { %1547 = vsyncpa [#allocation7], 1 }

</bundles_post_ra>
